<compile_context>
chip_gen: v7x
topology: tpu7x:2x2x1
jax: 0.10.0
libtpu: 0.0.40
codegen_flags: <defaults>
</compile_context>

<pallas_src>
import functools
import math

import jax
import jax.numpy as jnp
from jax import lax
from jax.experimental import pallas as pl
from jax.experimental.pallas import tpu as pltpu


# ---------------------------------------------------------------------------
# Shared numerics helpers (used by the kernels and the pure-JAX reference).
# ---------------------------------------------------------------------------

def _layer_norm(x, g, b, eps=1e-5):
    mu = jnp.mean(x, axis=-1, keepdims=True)
    xc = x - mu
    var = jnp.mean(xc * xc, axis=-1, keepdims=True)
    return xc * lax.rsqrt(var + eps) * g + b


def _softmax_last(s):
    m = jnp.max(s, axis=-1, keepdims=True)
    e = jnp.exp(s - m)
    return e / jnp.sum(e, axis=-1, keepdims=True)


def _softmax_last_approx(s):
    # In-kernel softmax: the divide goes to the EUP slot via approximate reciprocal.
    m = jnp.max(s, axis=-1, keepdims=True)
    e = jnp.exp(s - m)
    return e * pl.reciprocal(jnp.sum(e, axis=-1, keepdims=True), approx=True)


def _pos_encoding_table(n_sents, d_model, dtype):
    # Matches pos_encode() in the PyTorch module (sin on even dims, cos on odd dims).
    pos = jnp.arange(n_sents, dtype=jnp.float32)[:, None]        # [S, 1]
    dim = jnp.arange(d_model)                                    # [D]
    dim_even = (2 * (dim // 2)).astype(jnp.float32)
    base = pos / jnp.power(10000.0, dim_even / d_model)          # [S, D]
    table = jnp.where(dim % 2 == 0, jnp.sin(base), jnp.cos(base))
    return table.astype(dtype)


def _scoped_vmem_limit(bytes_needed):
    # Explicit scoped-VMEM limit: always >= the per-generation defaults (16/32 MiB),
    # and <= 56 MiB so the same plan fits v7x's 64 MiB per-TensorCore VMEM.
    return int(min(max(4 * int(bytes_needed) + (8 << 20), 32 << 20), 56 << 20))


# ---------------------------------------------------------------------------
# Kernel 1: sentence-level LinFeatConcat  (cat([x, f]) @ W^T == x@Wx + f@Wf).
# ---------------------------------------------------------------------------

def _sent_linfeat_kernel(x_ref, f_ref, wx_ref, wf_ref, o_ref):
    # bf16 MXU operands, f32 accumulation.  No concat is ever materialized in HBM.
    acc = jnp.dot(x_ref[...].astype(jnp.bfloat16), wx_ref[...],
                  preferred_element_type=jnp.float32)
    acc = acc + jnp.dot(f_ref[...].astype(jnp.bfloat16), wf_ref[...],
                        preferred_element_type=jnp.float32)
    o_ref[...] = acc.astype(o_ref.dtype)


def _sent_linfeat_forward(sent_emb, feats, wx, wf):
    B, D = sent_emb.shape
    Fs = feats.shape[1]
    n_out = wx.shape[1]
    # Large row tiles (multiple of 256 for the v6e/v7x MXU); pl.cdiv handles a
    # ragged tail, so no divisibility constraint and no tiny-TM fallback.
    if B > 1024:
        tm = 1024
    elif B > 512:
        tm = 512
    else:
        tm = B                                                    # one full block
    grid = (pl.cdiv(B, tm),)
    need = 2 * tm * (D + Fs + n_out) * 4 + (wx.size + wf.size) * wx.dtype.itemsize
    return pl.pallas_call(
        _sent_linfeat_kernel,
        out_shape=jax.ShapeDtypeStruct((B, n_out), sent_emb.dtype),
        grid=grid,
        in_specs=[
            pl.BlockSpec((tm, D), lambda i: (i, 0)),              # streamed embeddings
            pl.BlockSpec((tm, Fs), lambda i: (i, 0)),             # streamed features
            pl.BlockSpec((D, n_out), lambda i: (0, 0)),           # resident Wx (bf16)
            pl.BlockSpec((Fs, n_out), lambda i: (0, 0)),          # resident Wf (bf16)
        ],
        out_specs=pl.BlockSpec((tm, n_out), lambda i: (i, 0)),
        compiler_params=pltpu.CompilerParams(
            dimension_semantics=("parallel",),
            vmem_limit_bytes=_scoped_vmem_limit(need)),
    )(sent_emb, feats, wx, wf)


# ---------------------------------------------------------------------------
# Kernel 2: document ReadNetBlock + head, TD documents per grid step.
# ---------------------------------------------------------------------------

def _doc_tower_kernel(
    x_ref, fd_ref, pos_ref,
    wq_ref, wk_ref, wv_ref,
    ln1g_ref, ln1b_ref,
    ff1w_ref, ff1b_ref, ff2w_ref, ff2b_ref,
    ln2g_ref, ln2b_ref,
    ltw_ref, ltb_ref,
    aggq_ref,
    wlfx_ref, wlff_ref,
    headw_ref, headb_ref,
    o_ref,
    *, n_heads,
):
    td, s, d = x_ref.shape
    n_blocks = wq_ref.shape[0]
    dh = d // n_heads
    inv_sqrt_dh = 1.0 / math.sqrt(dh)

    # pos_encode: add the shared sin/cos table; keep activations f32 for all
    # elementwise/EUP math (v5e has no bf16 VPU/EUP path).
    x = x_ref[...].astype(jnp.float32) + pos_ref[...]             # (TD, S, D)
    x2 = x.reshape(td * s, d)                                     # flattened slab

    # Per-head lane masks, hoisted out of the encoder-block loop.  Heads live in
    # contiguous lane ranges; masking q alone is exact for the score matmul
    # (zeroed lanes contribute nothing) and masking v places each head's output
    # in the right lanes so the per-head sum rebuilds torch.cat(outs, dim=2).
    lane = lax.broadcasted_iota(jnp.int32, (1, d), 1)
    head_masks = [(lane >= h * dh) & (lane < (h + 1) * dh) for h in range(n_heads)]

    def encoder_block(b, x2):
        xb = x2.astype(jnp.bfloat16)
        q = jnp.dot(xb, wq_ref[b], preferred_element_type=jnp.float32)
        k = jnp.dot(xb, wk_ref[b], preferred_element_type=jnp.float32)
        v = jnp.dot(xb, wv_ref[b], preferred_element_type=jnp.float32)
        q3 = q.reshape(td, s, d).astype(jnp.bfloat16)
        k3 = k.reshape(td, s, d).astype(jnp.bfloat16)
        v3 = v.reshape(td, s, d).astype(jnp.bfloat16)
        mha = jnp.zeros((td, s, d), jnp.float32)
        for hm in head_masks:
            qh = jnp.where(hm, q3, 0.0)                           # k is NOT masked
            scores = lax.dot_general(
                qh, k3, (((2,), (2,)), ((0,), (0,))),
                preferred_element_type=jnp.float32) * inv_sqrt_dh
            p = _softmax_last_approx(scores).astype(jnp.bfloat16)  # unmasked encoder attn
            vh = jnp.where(hm, v3, 0.0)
            mha = mha + lax.dot_general(
                p, vh, (((2,), (1,)), ((0,), (0,))),
                preferred_element_type=jnp.float32)
        x2 = _layer_norm(x2 + mha.reshape(td * s, d), ln1g_ref[b], ln1b_ref[b])
        hid = jnp.maximum(
            jnp.dot(x2.astype(jnp.bfloat16), ff1w_ref[b],
                    preferred_element_type=jnp.float32) + ff1b_ref[b], 0.0)
        ff = jnp.dot(hid.astype(jnp.bfloat16), ff2w_ref[b],
                     preferred_element_type=jnp.float32) + ff2b_ref[b]
        return _layer_norm(x2 + ff, ln2g_ref[b], ln2b_ref[b])

    # fori_loop keeps code size / vreg live ranges bounded for deep stacks.
    x2 = lax.fori_loop(0, n_blocks, encoder_block, x2)

    # LinTanh (Linear with bias + tanh), on the flattened slab.
    xt = jnp.tanh(jnp.dot(x2.astype(jnp.bfloat16), ltw_ref[...],
                          preferred_element_type=jnp.float32) + ltb_ref[...])
    x3 = xt.reshape(td, s, d)

    # AttentionAggregation: per-doc softmax over sentences of x . query.
    logits = jnp.sum(x3 * aggq_ref[...], axis=-1)                 # (TD, S)
    m = jnp.max(logits, axis=-1, keepdims=True)
    e = jnp.exp(logits - m)
    attn = e * pl.reciprocal(jnp.sum(e, axis=-1, keepdims=True), approx=True)
    enc = jnp.sum(attn[..., None] * x3, axis=1)                   # (TD, D)

    # tanh(LinFeatConcat(enc, feats_doc)) with the weight pre-split by input rows.
    fd = fd_ref[...].reshape(td, fd_ref.shape[2]).astype(jnp.float32)
    dv = jnp.dot(enc.astype(jnp.bfloat16), wlfx_ref[...],
                 preferred_element_type=jnp.float32)
    dv = dv + jnp.dot(fd.astype(jnp.bfloat16), wlff_ref[...],
                      preferred_element_type=jnp.float32)
    doc_vec = jnp.tanh(dv)                                        # (TD, D+Fd)

    # Head: Linear(D+Fd, 1) with bias, as a lane reduction; emit one (1,1,TD) slab
    # per grid step instead of a per-doc (1,1,1) masked store.
    y = jnp.sum(doc_vec * headw_ref[...], axis=-1) + headb_ref[0, 0]   # (TD,)
    o_ref[...] = y.reshape(1, 1, td).astype(o_ref.dtype)


def _pick_doc_tile(n_docs, n_sents):
    # Target ~256 flattened sentence rows per grid step so the shared QKV/FFN/LinTanh
    # projections present MXU-sized M tiles; never more docs than we actually have.
    return max(1, min(n_docs, 256 // max(n_sents, 1)))


def _doc_tower_forward(docs, pos, feats_doc, params, *, n_heads):
    n_docs, s, d = docs.shape
    fd_dim = feats_doc.shape[-1]
    td = _pick_doc_tile(n_docs, s)
    n_steps = pl.cdiv(n_docs, td)
    pad = n_steps * td - n_docs
    if pad:
        # Zero-pad the doc axis so every grid step sees well-defined data; padded
        # docs stay finite through LN/softmax and are sliced off afterwards.
        docs = jnp.pad(docs, ((0, pad), (0, 0), (0, 0)))
        feats_doc = jnp.pad(feats_doc, ((0, pad), (0, 0)))
    fd3 = feats_doc.reshape(n_steps * td, 1, fd_dim)

    weight_names = ("wq_t", "wk_t", "wv_t", "ln1_g", "ln1_b",
                    "ff1_wt", "ff1_b", "ff2_wt", "ff2_b",
                    "ln2_g", "ln2_b", "lt_wt", "lt_b", "agg_q",
                    "doc_lf_wx_t", "doc_lf_wf_t", "head_w", "head_b")
    weights = [params[k] for k in weight_names]

    def resident(a):
        nd = a.ndim
        return pl.BlockSpec(a.shape, lambda i: (0,) * nd)         # stays in VMEM

    weight_bytes = sum(w.size * w.dtype.itemsize for w in weights)
    block_bytes = 2 * (td * s * d + td * fd_dim + td) * 4 + s * d * 4
    # TODO(synk): at realistic sizes (d_model=768, n_blocks>=6) stream the per-block
    # weights with pltpu.emit_pipeline over n_blocks instead of keeping them all
    # resident, so the plan also fits v7x's 64 MiB per-TensorCore VMEM.
    kernel = functools.partial(_doc_tower_kernel, n_heads=n_heads)
    out = pl.pallas_call(
        kernel,
        out_shape=jax.ShapeDtypeStruct((n_steps, 1, td), docs.dtype),
        grid=(n_steps,),
        in_specs=[
            pl.BlockSpec((td, s, d), lambda i: (i, 0, 0)),        # TD docs per step
            pl.BlockSpec((td, 1, fd_dim), lambda i: (i, 0, 0)),
            resident(pos),
        ] + [resident(w) for w in weights],
        out_specs=pl.BlockSpec((1, 1, td), lambda i: (i, 0, 0)),
        compiler_params=pltpu.CompilerParams(
            dimension_semantics=("parallel",),                    # shard doc tiles across TCs
            vmem_limit_bytes=_scoped_vmem_limit(weight_bytes + block_bytes)),
    )(docs, fd3, pos, *weights)
    return out.reshape(n_steps * td)[:n_docs]


# ---------------------------------------------------------------------------
# Full forward + parameter init + pure-JAX reference.
# ---------------------------------------------------------------------------

@functools.partial(jax.jit, static_argnames=("n_heads",))
def readnet_forward(sent_emb, feats_sent, feats_doc, params, *, n_heads):
    n_docs, n_sents, fs_dim = feats_sent.shape
    b, d = sent_emb.shape
    sents = _sent_linfeat_forward(sent_emb, feats_sent.reshape(b, fs_dim),
                                  params["sent_lf_wx_t"], params["sent_lf_wf_t"])
    docs = sents.reshape(n_docs, n_sents, d)
    pos = _pos_encoding_table(n_sents, d, jnp.float32)
    return _doc_tower_forward(docs, pos, feats_doc, params, n_heads=n_heads)


def init_params(key, *, d_model, n_heads, n_blocks, n_feats_sent, n_feats_doc):
    """Synthetic params; all repacking (transpose / split / bf16 cast) happens ONCE here."""
    assert d_model % n_heads == 0
    D, Fs, Fd = d_model, n_feats_sent, n_feats_doc
    n_out_doc = D + Fd
    keys = iter(jax.random.split(key, 16 + 8 * n_blocks))
    bf16 = jnp.bfloat16

    def linear_w(out_f, in_f):
        bound = 1.0 / math.sqrt(in_f)
        return jax.random.uniform(next(keys), (out_f, in_f), jnp.float32, -bound, bound)

    def linear_b(out_f, in_f):
        bound = 1.0 / math.sqrt(in_f)
        return jax.random.uniform(next(keys), (out_f,), jnp.float32, -bound, bound)

    p = {}
    # Sentence-level LinFeatConcat (bias=False in torch): W^T split by input rows so
    # the kernel never materializes cat([x, feats]).  MXU weights stored bf16.
    w_sent_t = jnp.transpose(linear_w(D, D + Fs))                 # [D+Fs, D]
    p["sent_lf_wx_t"] = w_sent_t[:D].astype(bf16)
    p["sent_lf_wf_t"] = w_sent_t[D:].astype(bf16)

    wq, wk, wv, f1w, f1b, f2w, f2b = [], [], [], [], [], [], []
    for _ in range(n_blocks):
        wq.append(jnp.transpose(linear_w(D, D)))
        wk.append(jnp.transpose(linear_w(D, D)))
        wv.append(jnp.transpose(linear_w(D, D)))
        f1w.append(jnp.transpose(linear_w(D, D)))
        f1b.append(linear_b(D, D).reshape(1, D))
        f2w.append(jnp.transpose(linear_w(D, D)))
        f2b.append(linear_b(D, D).reshape(1, D))
    p["wq_t"] = jnp.stack(wq).astype(bf16)
    p["wk_t"] = jnp.stack(wk).astype(bf16)
    p["wv_t"] = jnp.stack(wv).astype(bf16)
    p["ff1_wt"] = jnp.stack(f1w).astype(bf16)
    p["ff1_b"] = jnp.stack(f1b)                                   # biases stay f32
    p["ff2_wt"] = jnp.stack(f2w).astype(bf16)
    p["ff2_b"] = jnp.stack(f2b)
    p["ln1_g"] = jnp.ones((n_blocks, 1, D), jnp.float32)
    p["ln1_b"] = jnp.zeros((n_blocks, 1, D), jnp.float32)
    p["ln2_g"] = jnp.ones((n_blocks, 1, D), jnp.float32)
    p["ln2_b"] = jnp.zeros((n_blocks, 1, D), jnp.float32)

    p["lt_wt"] = jnp.transpose(linear_w(D, D)).astype(bf16)
    p["lt_b"] = linear_b(D, D).reshape(1, D)
    p["agg_q"] = linear_w(1, D)                                   # [1, D], bias=False

    # Doc-level LinFeatConcat (bias=False): pre-split by input rows once, bf16.
    w_doc_t = jnp.transpose(linear_w(n_out_doc, D + Fd))          # [D+Fd, D+Fd]
    p["doc_lf_wx_t"] = w_doc_t[:D].astype(bf16)
    p["doc_lf_wf_t"] = w_doc_t[D:].astype(bf16)

    p["head_w"] = linear_w(1, n_out_doc)                          # [1, D+Fd], f32
    p["head_b"] = linear_b(1, n_out_doc).reshape(1, 1)
    return p


def readnet_reference(sent_emb, feats_sent, feats_doc, params, *, n_heads):
    """Pure-JAX mirror of the PyTorch ReadNetModel forward (f32 math, same weights)."""
    n_docs, n_sents, fs_dim = feats_sent.shape
    b, d = sent_emb.shape
    n_blocks = params["wq_t"].shape[0]
    dh = d // n_heads
    f32 = lambda a: a.astype(jnp.float32)

    sents = sent_emb @ f32(params["sent_lf_wx_t"]) \
        + feats_sent.reshape(b, fs_dim) @ f32(params["sent_lf_wf_t"])
    x = sents.reshape(n_docs, n_sents, d) \
        + _pos_encoding_table(n_sents, d, jnp.float32)[None]

    for blk in range(n_blocks):
        q = x @ f32(params["wq_t"][blk])
        k = x @ f32(params["wk_t"][blk])
        v = x @ f32(params["wv_t"][blk])
        outs = []
        for h in range(n_heads):
            sl = slice(h * dh, (h + 1) * dh)
            s = jnp.einsum("bsd,btd->bst", q[..., sl], k[..., sl]) / math.sqrt(dh)
            outs.append(jnp.einsum("bst,btd->bsd", _softmax_last(s), v[..., sl]))
        mha = jnp.concatenate(outs, axis=-1)
        x = _layer_norm(x + mha, params["ln1_g"][blk], params["ln1_b"][blk])
        hid = jnp.maximum(x @ f32(params["ff1_wt"][blk]) + params["ff1_b"][blk], 0.0)
        ff = hid @ f32(params["ff2_wt"][blk]) + params["ff2_b"][blk]
        x = _layer_norm(x + ff, params["ln2_g"][blk], params["ln2_b"][blk])

    x = jnp.tanh(x @ f32(params["lt_wt"]) + params["lt_b"])
    logits = jnp.einsum("bsd,d->bs", x, params["agg_q"][0])
    attn = jax.nn.softmax(logits, axis=1)
    enc = jnp.einsum("bs,bsd->bd", attn, x)
    doc_vec = jnp.tanh(enc @ f32(params["doc_lf_wx_t"])
                       + feats_doc @ f32(params["doc_lf_wf_t"]))
    return doc_vec @ params["head_w"][0] + params["head_b"][0, 0]


if __name__ == "__main__":
    # Small demo shapes: 2 docs x 8 sentences, d_model=32, 2 heads, 2 encoder blocks.
    n_docs, n_sents = 2, 8
    d_model, n_heads, n_blocks = 32, 2, 2
    n_feats_sent, n_feats_doc = 4, 4

    key = jax.random.PRNGKey(0)
    kp, ke, kfs, kfd = jax.random.split(key, 4)
    params = init_params(kp, d_model=d_model, n_heads=n_heads, n_blocks=n_blocks,
                         n_feats_sent=n_feats_sent, n_feats_doc=n_feats_doc)

    # TODO(synk): self.blocks(x)['sentence_embedding'] (the external HuggingFace
    # sentence-transformer stack) has no self-contained Pallas equivalent; the
    # kernels consume the per-sentence embedding tensor directly.
    sent_emb = jax.random.normal(ke, (n_docs * n_sents, d_model), jnp.float32)
    feats_sent = jax.random.normal(kfs, (n_docs, n_sents, n_feats_sent), jnp.float32)
    feats_doc = jax.random.normal(kfd, (n_docs, n_feats_doc), jnp.float32)

    out = readnet_forward(sent_emb, feats_sent, feats_doc, params, n_heads=n_heads)
    out = jax.block_until_ready(out)
    assert out.shape == (n_docs,)
    assert bool(jnp.all(jnp.isfinite(out)))

    ref = readnet_reference(sent_emb, feats_sent, feats_doc, params, n_heads=n_heads)
    assert jnp.allclose(out, ref, atol=5e-2, rtol=5e-2), (out, ref)

    # Isolated check of the split-weight sentence LinFeatConcat kernel.
    fs2 = feats_sent.reshape(-1, n_feats_sent)
    sents_k = _sent_linfeat_forward(sent_emb, fs2, params["sent_lf_wx_t"],
                                    params["sent_lf_wf_t"])
    sents_r = sent_emb @ params["sent_lf_wx_t"].astype(jnp.float32) \
        + fs2 @ params["sent_lf_wf_t"].astype(jnp.float32)
    assert jnp.allclose(sents_k, sents_r, atol=2e-2, rtol=2e-2)

    print("KERNEL_OK")
</pallas_src>

<mosaic_0001>
module attributes {stable_mosaic.version = 11 : i64} {
  func.func @_sent_linfeat_kernel(%arg0: i32, %arg1: memref<16x32xf32, #tpu.memory_space<vmem>>, %arg2: memref<16x4xf32, #tpu.memory_space<vmem>>, %arg3: memref<32x32xbf16, #tpu.memory_space<vmem>>, %arg4: memref<4x32xbf16, #tpu.memory_space<vmem>>, %arg5: memref<16x32xf32, #tpu.memory_space<vmem>>) attributes {dimension_semantics = [#tpu.dimension_semantics<parallel>], iteration_bounds = array<i64: 1>, scalar_prefetch = 0 : i64, scratch_operands = 0 : i64, tpu.core_type = #tpu.core_type<tc>, window_params = [{transform_indices = @transform_0, window_bounds = array<i64: 16, 32>}, {transform_indices = @transform_1, window_bounds = array<i64: 16, 4>}, {pipeline_mode = #tpu.pipeline_mode<synchronous>, transform_indices = @transform_2, window_bounds = array<i64: 32, 32>}, {pipeline_mode = #tpu.pipeline_mode<synchronous>, transform_indices = @transform_3, window_bounds = array<i64: 4, 32>}, {transform_indices = @transform_4, window_bounds = array<i64: 16, 32>}]} {
    %c0 = arith.constant 0 : index
    %c0_0 = arith.constant 0 : index
    %0 = vector.load %arg1[%c0, %c0_0] : memref<16x32xf32, #tpu.memory_space<vmem>>, vector<16x32xf32>
    %1 = arith.truncf %0 : vector<16x32xf32> to vector<16x32xbf16>
    %c0_1 = arith.constant 0 : index
    %c0_2 = arith.constant 0 : index
    %2 = vector.load %arg3[%c0_1, %c0_2] : memref<32x32xbf16, #tpu.memory_space<vmem>>, vector<32x32xbf16>
    %cst = arith.constant dense<0.000000e+00> : vector<16x32xf32>
    %3 = tpu.matmul %1, %2, %cst {dimension_numbers = #tpu.dot_dimension_numbers<[1], [0], [0], [1], [0, 0, 1, 1], [], []>} : vector<16x32xbf16>, vector<32x32xbf16>, vector<16x32xf32> -> vector<16x32xf32>
    %c0_3 = arith.constant 0 : index
    %c0_4 = arith.constant 0 : index
    %4 = vector.load %arg2[%c0_3, %c0_4] : memref<16x4xf32, #tpu.memory_space<vmem>>, vector<16x4xf32>
    %5 = arith.truncf %4 : vector<16x4xf32> to vector<16x4xbf16>
    %c0_5 = arith.constant 0 : index
    %c0_6 = arith.constant 0 : index
    %6 = vector.load %arg4[%c0_5, %c0_6] : memref<4x32xbf16, #tpu.memory_space<vmem>>, vector<4x32xbf16>
    %cst_7 = arith.constant dense<0.000000e+00> : vector<16x32xf32>
    %7 = tpu.matmul %5, %6, %cst_7 {dimension_numbers = #tpu.dot_dimension_numbers<[1], [0], [0], [1], [0, 0, 1, 1], [], []>} : vector<16x4xbf16>, vector<4x32xbf16>, vector<16x32xf32> -> vector<16x32xf32>
    %8 = arith.addf %3, %7 : vector<16x32xf32>
    %c0_8 = arith.constant 0 : index
    %c0_9 = arith.constant 0 : index
    %9 = vector.load %arg5[%c0_8, %c0_9] : memref<16x32xf32, #tpu.memory_space<vmem>>, vector<16x32xf32>
    tpu.vector_store %arg5[%c0_8, %c0_9], %8 {strides = array<i32>} : memref<16x32xf32, #tpu.memory_space<vmem>>, vector<16x32xf32>,
    return
  }
  func.func @transform_0(%arg0: i32) -> (i32, i32) {
    %c0_i32 = arith.constant 0 : i32
    %c0_i32_0 = arith.constant 0 : i32
    return %arg0, %c0_i32 : i32, i32
  }
  func.func @transform_1(%arg0: i32) -> (i32, i32) {
    %c0_i32 = arith.constant 0 : i32
    %c0_i32_0 = arith.constant 0 : i32
    return %arg0, %c0_i32 : i32, i32
  }
  func.func @transform_2(%arg0: i32) -> (i32, i32) {
    %c0_i32 = arith.constant 0 : i32
    %c0_i32_0 = arith.constant 0 : i32
    %c0_i32_1 = arith.constant 0 : i32
    return %c0_i32, %c0_i32_0 : i32, i32
  }
  func.func @transform_3(%arg0: i32) -> (i32, i32) {
    %c0_i32 = arith.constant 0 : i32
    %c0_i32_0 = arith.constant 0 : i32
    %c0_i32_1 = arith.constant 0 : i32
    return %c0_i32, %c0_i32_0 : i32, i32
  }
  func.func @transform_4(%arg0: i32) -> (i32, i32) {
    %c0_i32 = arith.constant 0 : i32
    %c0_i32_0 = arith.constant 0 : i32
    return %arg0, %c0_i32 : i32, i32
  }
}

module attributes {stable_mosaic.version = 11 : i64} {
  func.func @_doc_tower_kernel(%arg0: i32, %arg1: memref<2x8x32xf32, #tpu.memory_space<vmem>>, %arg2: memref<2x1x4xf32, #tpu.memory_space<vmem>>, %arg3: memref<8x32xf32, #tpu.memory_space<vmem>>, %arg4: memref<2x32x32xbf16, #tpu.memory_space<vmem>>, %arg5: memref<2x32x32xbf16, #tpu.memory_space<vmem>>, %arg6: memref<2x32x32xbf16, #tpu.memory_space<vmem>>, %arg7: memref<2x1x32xf32, #tpu.memory_space<vmem>>, %arg8: memref<2x1x32xf32, #tpu.memory_space<vmem>>, %arg9: memref<2x32x32xbf16, #tpu.memory_space<vmem>>, %arg10: memref<2x1x32xf32, #tpu.memory_space<vmem>>, %arg11: memref<2x32x32xbf16, #tpu.memory_space<vmem>>, %arg12: memref<2x1x32xf32, #tpu.memory_space<vmem>>, %arg13: memref<2x1x32xf32, #tpu.memory_space<vmem>>, %arg14: memref<2x1x32xf32, #tpu.memory_space<vmem>>, %arg15: memref<32x32xbf16, #tpu.memory_space<vmem>>, %arg16: memref<1x32xf32, #tpu.memory_space<vmem>>, %arg17: memref<1x32xf32, #tpu.memory_space<vmem>>, %arg18: memref<32x36xbf16, #tpu.memory_space<vmem>>, %arg19: memref<4x36xbf16, #tpu.memory_space<vmem>>, %arg20: memref<1x36xf32, #tpu.memory_space<vmem>>, %arg21: memref<1x1xf32, #tpu.memory_space<vmem>>, %arg22: memref<1x1x2xf32, #tpu.memory_space<vmem>>) attributes {dimension_semantics = [#tpu.dimension_semantics<parallel>], iteration_bounds = array<i64: 1>, scalar_prefetch = 0 : i64, scratch_operands = 0 : i64, tpu.core_type = #tpu.core_type<tc>, window_params = [{transform_indices = @transform_0, window_bounds = array<i64: 2, 8, 32>}, {transform_indices = @transform_1, window_bounds = array<i64: 2, 1, 4>}, {pipeline_mode = #tpu.pipeline_mode<synchronous>, transform_indices = @transform_2, window_bounds = array<i64: 8, 32>}, {pipeline_mode = #tpu.pipeline_mode<synchronous>, transform_indices = @transform_3, window_bounds = array<i64: 2, 32, 32>}, {pipeline_mode = #tpu.pipeline_mode<synchronous>, transform_indices = @transform_4, window_bounds = array<i64: 2, 32, 32>}, {pipeline_mode = #tpu.pipeline_mode<synchronous>, transform_indices = @transform_5, window_bounds = array<i64: 2, 32, 32>}, {pipeline_mode = #tpu.pipeline_mode<synchronous>, transform_indices = @transform_6, window_bounds = array<i64: 2, 1, 32>}, {pipeline_mode = #tpu.pipeline_mode<synchronous>, transform_indices = @transform_7, window_bounds = array<i64: 2, 1, 32>}, {pipeline_mode = #tpu.pipeline_mode<synchronous>, transform_indices = @transform_8, window_bounds = array<i64: 2, 32, 32>}, {pipeline_mode = #tpu.pipeline_mode<synchronous>, transform_indices = @transform_9, window_bounds = array<i64: 2, 1, 32>}, {pipeline_mode = #tpu.pipeline_mode<synchronous>, transform_indices = @transform_10, window_bounds = array<i64: 2, 32, 32>}, {pipeline_mode = #tpu.pipeline_mode<synchronous>, transform_indices = @transform_11, window_bounds = array<i64: 2, 1, 32>}, {pipeline_mode = #tpu.pipeline_mode<synchronous>, transform_indices = @transform_12, window_bounds = array<i64: 2, 1, 32>}, {pipeline_mode = #tpu.pipeline_mode<synchronous>, transform_indices = @transform_13, window_bounds = array<i64: 2, 1, 32>}, {pipeline_mode = #tpu.pipeline_mode<synchronous>, transform_indices = @transform_14, window_bounds = array<i64: 32, 32>}, {pipeline_mode = #tpu.pipeline_mode<synchronous>, transform_indices = @transform_15, window_bounds = array<i64: 1, 32>}, {pipeline_mode = #tpu.pipeline_mode<synchronous>, transform_indices = @transform_16, window_bounds = array<i64: 1, 32>}, {pipeline_mode = #tpu.pipeline_mode<synchronous>, transform_indices = @transform_17, window_bounds = array<i64: 32, 36>}, {pipeline_mode = #tpu.pipeline_mode<synchronous>, transform_indices = @transform_18, window_bounds = array<i64: 4, 36>}, {pipeline_mode = #tpu.pipeline_mode<synchronous>, transform_indices = @transform_19, window_bounds = array<i64: 1, 36>}, {pipeline_mode = #tpu.pipeline_mode<synchronous>, transform_indices = @transform_20, window_bounds = array<i64: 1, 1>}, {transform_indices = @transform_21, window_bounds = array<i64: 1, 1, 2>}]} {
    %c0 = arith.constant 0 : index
    %c0_0 = arith.constant 0 : index
    %c0_1 = arith.constant 0 : index
    %0 = vector.load %arg1[%c0, %c0_0, %c0_1] : memref<2x8x32xf32, #tpu.memory_space<vmem>>, vector<2x8x32xf32>
    %c0_2 = arith.constant 0 : index
    %c0_3 = arith.constant 0 : index
    %1 = vector.load %arg3[%c0_2, %c0_3] : memref<8x32xf32, #tpu.memory_space<vmem>>, vector<8x32xf32>
    %2 = vector.shape_cast %1 : vector<8x32xf32> to vector<1x8x32xf32>
    %3 = vector.broadcast %2 : vector<1x8x32xf32> to vector<2x8x32xf32>
    %4 = arith.addf %0, %3 : vector<2x8x32xf32>
    %5 = vector.shape_cast %4 : vector<2x8x32xf32> to vector<16x32xf32>
    %6 = tpu.iota {dimensions = array<i32: 1>} : vector<1x32xi32>
    %c0_i32 = arith.constant 0 : i32
    %7 = vector.broadcast %c0_i32 : i32 to vector<1x32xi32>
    %8 = arith.cmpi sge, %6, %7 : vector<1x32xi32>
    %c16_i32 = arith.constant 16 : i32
    %9 = vector.broadcast %c16_i32 : i32 to vector<1x32xi32>
    %10 = arith.cmpi slt, %6, %9 : vector<1x32xi32>
    %11 = arith.andi %8, %10 : vector<1x32xi1>
    %c16_i32_4 = arith.constant 16 : i32
    %12 = vector.broadcast %c16_i32_4 : i32 to vector<1x32xi32>
    %13 = arith.cmpi sge, %6, %12 : vector<1x32xi32>
    %c32_i32 = arith.constant 32 : i32
    %14 = vector.broadcast %c32_i32 : i32 to vector<1x32xi32>
    %15 = arith.cmpi slt, %6, %14 : vector<1x32xi32>
    %16 = arith.andi %13, %15 : vector<1x32xi1>
    %c0_i32_5 = arith.constant 0 : i32
    %c2_i32 = arith.constant 2 : i32
    %17 = arith.addi %c0_i32_5, %c2_i32 : i32
    %c1_i32 = arith.constant 1 : i32
    %18 = scf.for %arg23 = %c0_i32_5 to %17 step %c1_i32 iter_args(%arg24 = %5) -> (vector<16x32xf32>)  : i32 {
      %66 = arith.truncf %arg24 : vector<16x32xf32> to vector<16x32xbf16>
      %67 = arith.index_cast %arg23 : i32 to index
      %c0_34 = arith.constant 0 : index
      %c0_35 = arith.constant 0 : index
      %68 = vector.load %arg4[%67, %c0_34, %c0_35] : memref<2x32x32xbf16, #tpu.memory_space<vmem>>, vector<1x32x32xbf16>
      %69 = vector.shape_cast %68 : vector<1x32x32xbf16> to vector<32x32xbf16>
      %cst_36 = arith.constant dense<0.000000e+00> : vector<16x32xf32>
      %70 = tpu.matmul %66, %69, %cst_36 {dimension_numbers = #tpu.dot_dimension_numbers<[1], [0], [0], [1], [0, 0, 1, 1], [], []>} : vector<16x32xbf16>, vector<32x32xbf16>, vector<16x32xf32> -> vector<16x32xf32>
      %71 = arith.index_cast %arg23 : i32 to index
      %c0_37 = arith.constant 0 : index
      %c0_38 = arith.constant 0 : index
      %72 = vector.load %arg5[%71, %c0_37, %c0_38] : memref<2x32x32xbf16, #tpu.memory_space<vmem>>, vector<1x32x32xbf16>
      %73 = vector.shape_cast %72 : vector<1x32x32xbf16> to vector<32x32xbf16>
      %cst_39 = arith.constant dense<0.000000e+00> : vector<16x32xf32>
      %74 = tpu.matmul %66, %73, %cst_39 {dimension_numbers = #tpu.dot_dimension_numbers<[1], [0], [0], [1], [0, 0, 1, 1], [], []>} : vector<16x32xbf16>, vector<32x32xbf16>, vector<16x32xf32> -> vector<16x32xf32>
      %75 = arith.index_cast %arg23 : i32 to index
      %c0_40 = arith.constant 0 : index
      %c0_41 = arith.constant 0 : index
      %76 = vector.load %arg6[%75, %c0_40, %c0_41] : memref<2x32x32xbf16, #tpu.memory_space<vmem>>, vector<1x32x32xbf16>
      %77 = vector.shape_cast %76 : vector<1x32x32xbf16> to vector<32x32xbf16>
      %cst_42 = arith.constant dense<0.000000e+00> : vector<16x32xf32>
      %78 = tpu.matmul %66, %77, %cst_42 {dimension_numbers = #tpu.dot_dimension_numbers<[1], [0], [0], [1], [0, 0, 1, 1], [], []>} : vector<16x32xbf16>, vector<32x32xbf16>, vector<16x32xf32> -> vector<16x32xf32>
      %79 = vector.shape_cast %70 : vector<16x32xf32> to vector<2x8x32xf32>
      %80 = arith.truncf %79 : vector<2x8x32xf32> to vector<2x8x32xbf16>
      %81 = vector.shape_cast %74 : vector<16x32xf32> to vector<2x8x32xf32>
      %82 = arith.truncf %81 : vector<2x8x32xf32> to vector<2x8x32xbf16>
      %83 = vector.shape_cast %78 : vector<16x32xf32> to vector<2x8x32xf32>
      %84 = arith.truncf %83 : vector<2x8x32xf32> to vector<2x8x32xbf16>
      %cst_43 = arith.constant 0.000000e+00 : f32
      %85 = vector.broadcast %cst_43 : f32 to vector<2x8x32xf32>
      %cst_44 = arith.constant 0.000000e+00 : f32
      %86 = arith.truncf %cst_44 : f32 to bf16
      %87 = vector.shape_cast %11 : vector<1x32xi1> to vector<1x1x32xi1>
      %88 = vector.broadcast %87 : vector<1x1x32xi1> to vector<2x8x32xi1>
      %89 = vector.broadcast %86 : bf16 to vector<2x8x32xbf16>
      %90 = arith.select %88, %80, %89 : vector<2x8x32xi1>, vector<2x8x32xbf16>
      %cst_45 = arith.constant dense<0.000000e+00> : vector<2x8x8xf32>
      %91 = tpu.matmul %90, %82, %cst_45 {dimension_numbers = #tpu.dot_dimension_numbers<[2], [2], [1], [1], [0, 0, 0, 1, 1, 1], [0], [0]>} : vector<2x8x32xbf16>, vector<2x8x32xbf16>, vector<2x8x8xf32> -> vector<2x8x8xf32>
      %cst_46 = arith.constant 2.500000e-01 : f32
      %92 = vector.broadcast %cst_46 : f32 to vector<2x8x8xf32>
      %93 = arith.mulf %91, %92 : vector<2x8x8xf32>
      %cst_47 = arith.constant dense<0xFF800000> : vector<2x8xf32>
      %94 = vector.multi_reduction <maximumf>, %93, %cst_47 [2] : vector<2x8x8xf32> to vector<2x8xf32>
      %95 = vector.shape_cast %94 : vector<2x8xf32> to vector<2x8x1xf32>
      %96 = vector.broadcast %95 : vector<2x8x1xf32> to vector<2x8x8xf32>
      %97 = arith.subf %93, %96 : vector<2x8x8xf32>
      %98 = math.exp %97 : vector<2x8x8xf32>
      %cst_48 = arith.constant dense<0.000000e+00> : vector<2x8xf32>
      %99 = vector.multi_reduction <add>, %98, %cst_48 [2] : vector<2x8x8xf32> to vector<2x8xf32>
      %100 = vector.shape_cast %99 : vector<2x8xf32> to vector<2x8x1xf32>
      %101 = tpu.reciprocal %100 {approx = true} : vector<2x8x1xf32> -> vector<2x8x1xf32>
      %102 = vector.broadcast %101 : vector<2x8x1xf32> to vector<2x8x8xf32>
      %103 = arith.mulf %98, %102 : vector<2x8x8xf32>
      %104 = arith.truncf %103 : vector<2x8x8xf32> to vector<2x8x8xbf16>
      %cst_49 = arith.constant 0.000000e+00 : f32
      %105 = arith.truncf %cst_49 : f32 to bf16
      %106 = vector.shape_cast %11 : vector<1x32xi1> to vector<1x1x32xi1>
      %107 = vector.broadcast %106 : vector<1x1x32xi1> to vector<2x8x32xi1>
      %108 = vector.broadcast %105 : bf16 to vector<2x8x32xbf16>
      %109 = arith.select %107, %84, %108 : vector<2x8x32xi1>, vector<2x8x32xbf16>
      %cst_50 = arith.constant dense<0.000000e+00> : vector<2x8x32xf32>
      %110 = tpu.matmul %104, %109, %cst_50 {dimension_numbers = #tpu.dot_dimension_numbers<[2], [1], [1], [2], [0, 0, 0, 1, 1, 2], [0], [0]>} : vector<2x8x8xbf16>, vector<2x8x32xbf16>, vector<2x8x32xf32> -> vector<2x8x32xf32>
      %111 = arith.addf %85, %110 : vector<2x8x32xf32>
      %cst_51 = arith.constant 0.000000e+00 : f32
      %112 = arith.truncf %cst_51 : f32 to bf16
      %113 = vector.shape_cast %16 : vector<1x32xi1> to vector<1x1x32xi1>
      %114 = vector.broadcast %113 : vector<1x1x32xi1> to vector<2x8x32xi1>
      %115 = vector.broadcast %112 : bf16 to vector<2x8x32xbf16>
      %116 = arith.select %114, %80, %115 : vector<2x8x32xi1>, vector<2x8x32xbf16>
      %cst_52 = arith.constant dense<0.000000e+00> : vector<2x8x8xf32>
      %117 = tpu.matmul %116, %82, %cst_52 {dimension_numbers = #tpu.dot_dimension_numbers<[2], [2], [1], [1], [0, 0, 0, 1, 1, 1], [0], [0]>} : vector<2x8x32xbf16>, vector<2x8x32xbf16>, vector<2x8x8xf32> -> vector<2x8x8xf32>
      %cst_53 = arith.constant 2.500000e-01 : f32
      %118 = vector.broadcast %cst_53 : f32 to vector<2x8x8xf32>
      %119 = arith.mulf %117, %118 : vector<2x8x8xf32>
      %cst_54 = arith.constant dense<0xFF800000> : vector<2x8xf32>
      %120 = vector.multi_reduction <maximumf>, %119, %cst_54 [2] : vector<2x8x8xf32> to vector<2x8xf32>
      %121 = vector.shape_cast %120 : vector<2x8xf32> to vector<2x8x1xf32>
      %122 = vector.broadcast %121 : vector<2x8x1xf32> to vector<2x8x8xf32>
      %123 = arith.subf %119, %122 : vector<2x8x8xf32>
      %124 = math.exp %123 : vector<2x8x8xf32>
      %cst_55 = arith.constant dense<0.000000e+00> : vector<2x8xf32>
      %125 = vector.multi_reduction <add>, %124, %cst_55 [2] : vector<2x8x8xf32> to vector<2x8xf32>
      %126 = vector.shape_cast %125 : vector<2x8xf32> to vector<2x8x1xf32>
      %127 = tpu.reciprocal %126 {approx = true} : vector<2x8x1xf32> -> vector<2x8x1xf32>
      %128 = vector.broadcast %127 : vector<2x8x1xf32> to vector<2x8x8xf32>
      %129 = arith.mulf %124, %128 : vector<2x8x8xf32>
      %130 = arith.truncf %129 : vector<2x8x8xf32> to vector<2x8x8xbf16>
      %cst_56 = arith.constant 0.000000e+00 : f32
      %131 = arith.truncf %cst_56 : f32 to bf16
      %132 = vector.shape_cast %16 : vector<1x32xi1> to vector<1x1x32xi1>
      %133 = vector.broadcast %132 : vector<1x1x32xi1> to vector<2x8x32xi1>
      %134 = vector.broadcast %131 : bf16 to vector<2x8x32xbf16>
      %135 = arith.select %133, %84, %134 : vector<2x8x32xi1>, vector<2x8x32xbf16>
      %cst_57 = arith.constant dense<0.000000e+00> : vector<2x8x32xf32>
      %136 = tpu.matmul %130, %135, %cst_57 {dimension_numbers = #tpu.dot_dimension_numbers<[2], [1], [1], [2], [0, 0, 0, 1, 1, 2], [0], [0]>} : vector<2x8x8xbf16>, vector<2x8x32xbf16>, vector<2x8x32xf32> -> vector<2x8x32xf32>
      %137 = arith.addf %111, %136 : vector<2x8x32xf32>
      %138 = vector.shape_cast %137 : vector<2x8x32xf32> to vector<16x32xf32>
      %139 = arith.addf %arg24, %138 : vector<16x32xf32>
      %140 = arith.index_cast %arg23 : i32 to index
      %c0_58 = arith.constant 0 : index
      %c0_59 = arith.constant 0 : index
      %141 = vector.load %arg7[%140, %c0_58, %c0_59] : memref<2x1x32xf32, #tpu.memory_space<vmem>>, vector<1x1x32xf32>
      %142 = vector.shape_cast %141 : vector<1x1x32xf32> to vector<1x32xf32>
      %143 = arith.index_cast %arg23 : i32 to index
      %c0_60 = arith.constant 0 : index
      %c0_61 = arith.constant 0 : index
      %144 = vector.load %arg8[%143, %c0_60, %c0_61] : memref<2x1x32xf32, #tpu.memory_space<vmem>>, vector<1x1x32xf32>
      %145 = vector.shape_cast %144 : vector<1x1x32xf32> to vector<1x32xf32>
      %cst_62 = arith.constant dense<0.000000e+00> : vector<16xf32>
      %146 = vector.multi_reduction <add>, %139, %cst_62 [1] : vector<16x32xf32> to vector<16xf32>
      %147 = vector.shape_cast %146 : vector<16xf32> to vector<16x1xf32>
      %cst_63 = arith.constant 3.200000e+01 : f32
      %148 = vector.broadcast %cst_63 : f32 to vector<16x1xf32>
      %149 = arith.divf %147, %148 : vector<16x1xf32>
      %150 = vector.broadcast %149 : vector<16x1xf32> to vector<16x32xf32>
      %151 = arith.subf %139, %150 : vector<16x32xf32>
      %152 = arith.mulf %151, %151 : vector<16x32xf32>
      %cst_64 = arith.constant dense<0.000000e+00> : vector<16xf32>
      %153 = vector.multi_reduction <add>, %152, %cst_64 [1] : vector<16x32xf32> to vector<16xf32>
      %154 = vector.shape_cast %153 : vector<16xf32> to vector<16x1xf32>
      %cst_65 = arith.constant 3.200000e+01 : f32
      %155 = vector.broadcast %cst_65 : f32 to vector<16x1xf32>
      %156 = arith.divf %154, %155 : vector<16x1xf32>
      %cst_66 = arith.constant 9.99999974E-6 : f32
      %157 = vector.broadcast %cst_66 : f32 to vector<16x1xf32>
      %158 = arith.addf %156, %157 : vector<16x1xf32>
      %159 = math.rsqrt %158 : vector<16x1xf32>
      %160 = vector.broadcast %159 : vector<16x1xf32> to vector<16x32xf32>
      %161 = arith.mulf %151, %160 : vector<16x32xf32>
      %162 = vector.broadcast %142 : vector<1x32xf32> to vector<16x32xf32>
      %163 = arith.mulf %161, %162 : vector<16x32xf32>
      %164 = vector.broadcast %145 : vector<1x32xf32> to vector<16x32xf32>
      %165 = arith.addf %163, %164 : vector<16x32xf32>
      %166 = arith.truncf %165 : vector<16x32xf32> to vector<16x32xbf16>
      %167 = arith.index_cast %arg23 : i32 to index
      %c0_67 = arith.constant 0 : index
      %c0_68 = arith.constant 0 : index
      %168 = vector.load %arg9[%167, %c0_67, %c0_68] : memref<2x32x32xbf16, #tpu.memory_space<vmem>>, vector<1x32x32xbf16>
      %169 = vector.shape_cast %168 : vector<1x32x32xbf16> to vector<32x32xbf16>
      %cst_69 = arith.constant dense<0.000000e+00> : vector<16x32xf32>
      %170 = tpu.matmul %166, %169, %cst_69 {dimension_numbers = #tpu.dot_dimension_numbers<[1], [0], [0], [1], [0, 0, 1, 1], [], []>} : vector<16x32xbf16>, vector<32x32xbf16>, vector<16x32xf32> -> vector<16x32xf32>
      %171 = arith.index_cast %arg23 : i32 to index
      %c0_70 = arith.constant 0 : index
      %c0_71 = arith.constant 0 : index
      %172 = vector.load %arg10[%171, %c0_70, %c0_71] : memref<2x1x32xf32, #tpu.memory_space<vmem>>, vector<1x1x32xf32>
      %173 = vector.shape_cast %172 : vector<1x1x32xf32> to vector<1x32xf32>
      %174 = vector.broadcast %173 : vector<1x32xf32> to vector<16x32xf32>
      %175 = arith.addf %170, %174 : vector<16x32xf32>
      %cst_72 = arith.constant 0.000000e+00 : f32
      %176 = vector.broadcast %cst_72 : f32 to vector<16x32xf32>
      %177 = arith.maximumf %175, %176 : vector<16x32xf32>
      %178 = arith.truncf %177 : vector<16x32xf32> to vector<16x32xbf16>
      %179 = arith.index_cast %arg23 : i32 to index
      %c0_73 = arith.constant 0 : index
      %c0_74 = arith.constant 0 : index
      %180 = vector.load %arg11[%179, %c0_73, %c0_74] : memref<2x32x32xbf16, #tpu.memory_space<vmem>>, vector<1x32x32xbf16>
      %181 = vector.shape_cast %180 : vector<1x32x32xbf16> to vector<32x32xbf16>
      %cst_75 = arith.constant dense<0.000000e+00> : vector<16x32xf32>
      %182 = tpu.matmul %178, %181, %cst_75 {dimension_numbers = #tpu.dot_dimension_numbers<[1], [0], [0], [1], [0, 0, 1, 1], [], []>} : vector<16x32xbf16>, vector<32x32xbf16>, vector<16x32xf32> -> vector<16x32xf32>
      %183 = arith.index_cast %arg23 : i32 to index
      %c0_76 = arith.constant 0 : index
      %c0_77 = arith.constant 0 : index
      %184 = vector.load %arg12[%183, %c0_76, %c0_77] : memref<2x1x32xf32, #tpu.memory_space<vmem>>, vector<1x1x32xf32>
      %185 = vector.shape_cast %184 : vector<1x1x32xf32> to vector<1x32xf32>
      %186 = vector.broadcast %185 : vector<1x32xf32> to vector<16x32xf32>
      %187 = arith.addf %182, %186 : vector<16x32xf32>
      %188 = arith.addf %165, %187 : vector<16x32xf32>
      %189 = arith.index_cast %arg23 : i32 to index
      %c0_78 = arith.constant 0 : index
      %c0_79 = arith.constant 0 : index
      %190 = vector.load %arg13[%189, %c0_78, %c0_79] : memref<2x1x32xf32, #tpu.memory_space<vmem>>, vector<1x1x32xf32>
      %191 = vector.shape_cast %190 : vector<1x1x32xf32> to vector<1x32xf32>
      %192 = arith.index_cast %arg23 : i32 to index
      %c0_80 = arith.constant 0 : index
      %c0_81 = arith.constant 0 : index
      %193 = vector.load %arg14[%192, %c0_80, %c0_81] : memref<2x1x32xf32, #tpu.memory_space<vmem>>, vector<1x1x32xf32>
      %194 = vector.shape_cast %193 : vector<1x1x32xf32> to vector<1x32xf32>
      %cst_82 = arith.constant dense<0.000000e+00> : vector<16xf32>
      %195 = vector.multi_reduction <add>, %188, %cst_82 [1] : vector<16x32xf32> to vector<16xf32>
      %196 = vector.shape_cast %195 : vector<16xf32> to vector<16x1xf32>
      %cst_83 = arith.constant 3.200000e+01 : f32
      %197 = vector.broadcast %cst_83 : f32 to vector<16x1xf32>
      %198 = arith.divf %196, %197 : vector<16x1xf32>
      %199 = vector.broadcast %198 : vector<16x1xf32> to vector<16x32xf32>
      %200 = arith.subf %188, %199 : vector<16x32xf32>
      %201 = arith.mulf %200, %200 : vector<16x32xf32>
      %cst_84 = arith.constant dense<0.000000e+00> : vector<16xf32>
      %202 = vector.multi_reduction <add>, %201, %cst_84 [1] : vector<16x32xf32> to vector<16xf32>
      %203 = vector.shape_cast %202 : vector<16xf32> to vector<16x1xf32>
      %cst_85 = arith.constant 3.200000e+01 : f32
      %204 = vector.broadcast %cst_85 : f32 to vector<16x1xf32>
      %205 = arith.divf %203, %204 : vector<16x1xf32>
      %cst_86 = arith.constant 9.99999974E-6 : f32
      %206 = vector.broadcast %cst_86 : f32 to vector<16x1xf32>
      %207 = arith.addf %205, %206 : vector<16x1xf32>
      %208 = math.rsqrt %207 : vector<16x1xf32>
      %209 = vector.broadcast %208 : vector<16x1xf32> to vector<16x32xf32>
      %210 = arith.mulf %200, %209 : vector<16x32xf32>
      %211 = vector.broadcast %191 : vector<1x32xf32> to vector<16x32xf32>
      %212 = arith.mulf %210, %211 : vector<16x32xf32>
      %213 = vector.broadcast %194 : vector<1x32xf32> to vector<16x32xf32>
      %214 = arith.addf %212, %213 : vector<16x32xf32>
      scf.yield %214 : vector<16x32xf32>
    }
    %c2_i32_6 = arith.constant 2 : i32
    %19 = arith.truncf %18 : vector<16x32xf32> to vector<16x32xbf16>
    %c0_7 = arith.constant 0 : index
    %c0_8 = arith.constant 0 : index
    %20 = vector.load %arg15[%c0_7, %c0_8] : memref<32x32xbf16, #tpu.memory_space<vmem>>, vector<32x32xbf16>
    %cst = arith.constant dense<0.000000e+00> : vector<16x32xf32>
    %21 = tpu.matmul %19, %20, %cst {dimension_numbers = #tpu.dot_dimension_numbers<[1], [0], [0], [1], [0, 0, 1, 1], [], []>} : vector<16x32xbf16>, vector<32x32xbf16>, vector<16x32xf32> -> vector<16x32xf32>
    %c0_9 = arith.constant 0 : index
    %c0_10 = arith.constant 0 : index
    %22 = vector.load %arg16[%c0_9, %c0_10] : memref<1x32xf32, #tpu.memory_space<vmem>>, vector<1x32xf32>
    %23 = vector.broadcast %22 : vector<1x32xf32> to vector<16x32xf32>
    %24 = arith.addf %21, %23 : vector<16x32xf32>
    %25 = math.tanh %24 : vector<16x32xf32>
    %26 = vector.shape_cast %25 : vector<16x32xf32> to vector<2x8x32xf32>
    %c0_11 = arith.constant 0 : index
    %c0_12 = arith.constant 0 : index
    %27 = vector.load %arg17[%c0_11, %c0_12] : memref<1x32xf32, #tpu.memory_space<vmem>>, vector<1x32xf32>
    %28 = vector.shape_cast %27 : vector<1x32xf32> to vector<1x1x32xf32>
    %29 = vector.broadcast %28 : vector<1x1x32xf32> to vector<2x8x32xf32>
    %30 = arith.mulf %26, %29 : vector<2x8x32xf32>
    %cst_13 = arith.constant dense<0.000000e+00> : vector<2x8xf32>
    %31 = vector.multi_reduction <add>, %30, %cst_13 [2] : vector<2x8x32xf32> to vector<2x8xf32>
    %cst_14 = arith.constant dense<0xFF800000> : vector<2xf32>
    %32 = vector.multi_reduction <maximumf>, %31, %cst_14 [1] : vector<2x8xf32> to vector<2xf32>
    %33 = vector.shape_cast %32 : vector<2xf32> to vector<2x1xf32>
    %34 = vector.broadcast %33 : vector<2x1xf32> to vector<2x8xf32>
    %35 = arith.subf %31, %34 : vector<2x8xf32>
    %36 = math.exp %35 : vector<2x8xf32>
    %cst_15 = arith.constant dense<0.000000e+00> : vector<2xf32>
    %37 = vector.multi_reduction <add>, %36, %cst_15 [1] : vector<2x8xf32> to vector<2xf32>
    %38 = vector.shape_cast %37 : vector<2xf32> to vector<2x1xf32>
    %39 = tpu.reciprocal %38 {approx = true} : vector<2x1xf32> -> vector<2x1xf32>
    %40 = vector.broadcast %39 : vector<2x1xf32> to vector<2x8xf32>
    %41 = arith.mulf %36, %40 : vector<2x8xf32>
    %42 = vector.shape_cast %41 : vector<2x8xf32> to vector<2x8x1xf32>
    %43 = vector.broadcast %42 : vector<2x8x1xf32> to vector<2x8x32xf32>
    %44 = arith.mulf %43, %26 : vector<2x8x32xf32>
    %cst_16 = arith.constant dense<0.000000e+00> : vector<2x32xf32>
    %45 = vector.multi_reduction <add>, %44, %cst_16 [1] : vector<2x8x32xf32> to vector<2x32xf32>
    %c0_17 = arith.constant 0 : index
    %c0_18 = arith.constant 0 : index
    %c0_19 = arith.constant 0 : index
    %46 = vector.load %arg2[%c0_17, %c0_18, %c0_19] : memref<2x1x4xf32, #tpu.memory_space<vmem>>, vector<2x1x4xf32>
    %47 = vector.shape_cast %46 : vector<2x1x4xf32> to vector<2x4xf32>
    %48 = arith.truncf %45 : vector<2x32xf32> to vector<2x32xbf16>
    %c0_20 = arith.constant 0 : index
    %c0_21 = arith.constant 0 : index
    %49 = vector.load %arg18[%c0_20, %c0_21] : memref<32x36xbf16, #tpu.memory_space<vmem>>, vector<32x36xbf16>
    %cst_22 = arith.constant dense<0.000000e+00> : vector<2x36xf32>
    %50 = tpu.matmul %48, %49, %cst_22 {dimension_numbers = #tpu.dot_dimension_numbers<[1], [0], [0], [1], [0, 0, 1, 1], [], []>} : vector<2x32xbf16>, vector<32x36xbf16>, vector<2x36xf32> -> vector<2x36xf32>
    %51 = arith.truncf %47 : vector<2x4xf32> to vector<2x4xbf16>
    %c0_23 = arith.constant 0 : index
    %c0_24 = arith.constant 0 : index
    %52 = vector.load %arg19[%c0_23, %c0_24] : memref<4x36xbf16, #tpu.memory_space<vmem>>, vector<4x36xbf16>
    %cst_25 = arith.constant dense<0.000000e+00> : vector<2x36xf32>
    %53 = tpu.matmul %51, %52, %cst_25 {dimension_numbers = #tpu.dot_dimension_numbers<[1], [0], [0], [1], [0, 0, 1, 1], [], []>} : vector<2x4xbf16>, vector<4x36xbf16>, vector<2x36xf32> -> vector<2x36xf32>
    %54 = arith.addf %50, %53 : vector<2x36xf32>
    %55 = math.tanh %54 : vector<2x36xf32>
    %c0_26 = arith.constant 0 : index
    %c0_27 = arith.constant 0 : index
    %56 = vector.load %arg20[%c0_26, %c0_27] : memref<1x36xf32, #tpu.memory_space<vmem>>, vector<1x36xf32>
    %57 = vector.broadcast %56 : vector<1x36xf32> to vector<2x36xf32>
    %58 = arith.mulf %55, %57 : vector<2x36xf32>
    %cst_28 = arith.constant dense<0.000000e+00> : vector<2xf32>
    %59 = vector.multi_reduction <add>, %58, %cst_28 [1] : vector<2x36xf32> to vector<2xf32>
    %c0_29 = arith.constant 0 : index
    %c0_30 = arith.constant 0 : index
    %60 = vector.load %arg21[%c0_29, %c0_30] : memref<1x1xf32, #tpu.memory_space<vmem>>, vector<1x1xf32>
    %61 = vector.extract %60[0, 0] : f32 from vector<1x1xf32>
    %62 = vector.broadcast %61 : f32 to vector<2xf32>
    %63 = arith.addf %59, %62 : vector<2xf32>
    %64 = vector.shape_cast %63 : vector<2xf32> to vector<1x1x2xf32>
    %c0_31 = arith.constant 0 : index
    %c0_32 = arith.constant 0 : index
    %c0_33 = arith.constant 0 : index
    %65 = vector.load %arg22[%c0_31, %c0_32, %c0_33] : memref<1x1x2xf32, #tpu.memory_space<vmem>>, vector<1x1x2xf32>
    tpu.vector_store %arg22[%c0_31, %c0_32, %c0_33], %64 {strides = array<i32>} : memref<1x1x2xf32, #tpu.memory_space<vmem>>, vector<1x1x2xf32>,
    return
  }
  func.func @transform_0(%arg0: i32) -> (i32, i32, i32) {
    %c0_i32 = arith.constant 0 : i32
    %c0_i32_0 = arith.constant 0 : i32
    %c0_i32_1 = arith.constant 0 : i32
    return %arg0, %c0_i32, %c0_i32_0 : i32, i32, i32
  }
  func.func @transform_1(%arg0: i32) -> (i32, i32, i32) {
    %c0_i32 = arith.constant 0 : i32
    %c0_i32_0 = arith.constant 0 : i32
    %c0_i32_1 = arith.constant 0 : i32
    return %arg0, %c0_i32, %c0_i32_0 : i32, i32, i32
  }
  func.func @transform_2(%arg0: i32) -> (i32, i32) {
    %c0_i32 = arith.constant 0 : i32
    %c0_i32_0 = arith.constant 0 : i32
    %c0_i32_1 = arith.constant 0 : i32
    return %c0_i32, %c0_i32_0 : i32, i32
  }
  func.func @transform_3(%arg0: i32) -> (i32, i32, i32) {
    %c0_i32 = arith.constant 0 : i32
    %c0_i32_0 = arith.constant 0 : i32
    %c0_i32_1 = arith.constant 0 : i32
    %c0_i32_2 = arith.constant 0 : i32
    return %c0_i32, %c0_i32_0, %c0_i32_1 : i32, i32, i32
  }
  func.func @transform_4(%arg0: i32) -> (i32, i32, i32) {
    %c0_i32 = arith.constant 0 : i32
    %c0_i32_0 = arith.constant 0 : i32
    %c0_i32_1 = arith.constant 0 : i32
    %c0_i32_2 = arith.constant 0 : i32
    return %c0_i32, %c0_i32_0, %c0_i32_1 : i32, i32, i32
  }
  func.func @transform_5(%arg0: i32) -> (i32, i32, i32) {
    %c0_i32 = arith.constant 0 : i32
    %c0_i32_0 = arith.constant 0 : i32
    %c0_i32_1 = arith.constant 0 : i32
    %c0_i32_2 = arith.constant 0 : i32
    return %c0_i32, %c0_i32_0, %c0_i32_1 : i32, i32, i32
  }
  func.func @transform_6(%arg0: i32) -> (i32, i32, i32) {
    %c0_i32 = arith.constant 0 : i32
    %c0_i32_0 = arith.constant 0 : i32
    %c0_i32_1 = arith.constant 0 : i32
    %c0_i32_2 = arith.constant 0 : i32
    return %c0_i32, %c0_i32_0, %c0_i32_1 : i32, i32, i32
  }
  func.func @transform_7(%arg0: i32) -> (i32, i32, i32) {
    %c0_i32 = arith.constant 0 : i32
    %c0_i32_0 = arith.constant 0 : i32
    %c0_i32_1 = arith.constant 0 : i32
    %c0_i32_2 = arith.constant 0 : i32
    return %c0_i32, %c0_i32_0, %c0_i32_1 : i32, i32, i32
  }
  func.func @transform_8(%arg0: i32) -> (i32, i32, i32) {
    %c0_i32 = arith.constant 0 : i32
    %c0_i32_0 = arith.constant 0 : i32
    %c0_i32_1 = arith.constant 0 : i32
    %c0_i32_2 = arith.constant 0 : i32
    return %c0_i32, %c0_i32_0, %c0_i32_1 : i32, i32, i32
  }
  func.func @transform_9(%arg0: i32) -> (i32, i32, i32) {
    %c0_i32 = arith.constant 0 : i32
    %c0_i32_0 = arith.constant 0 : i32
    %c0_i32_1 = arith.constant 0 : i32
    %c0_i32_2 = arith.constant 0 : i32
    return %c0_i32, %c0_i32_0, %c0_i32_1 : i32, i32, i32
  }
  func.func @transform_10(%arg0: i32) -> (i32, i32, i32) {
    %c0_i32 = arith.constant 0 : i32
    %c0_i32_0 = arith.constant 0 : i32
    %c0_i32_1 = arith.constant 0 : i32
    %c0_i32_2 = arith.constant 0 : i32
    return %c0_i32, %c0_i32_0, %c0_i32_1 : i32, i32, i32
  }
  func.func @transform_11(%arg0: i32) -> (i32, i32, i32) {
    %c0_i32 = arith.constant 0 : i32
    %c0_i32_0 = arith.constant 0 : i32
    %c0_i32_1 = arith.constant 0 : i32
    %c0_i32_2 = arith.constant 0 : i32
    return %c0_i32, %c0_i32_0, %c0_i32_1 : i32, i32, i32
  }
  func.func @transform_12(%arg0: i32) -> (i32, i32, i32) {
    %c0_i32 = arith.constant 0 : i32
    %c0_i32_0 = arith.constant 0 : i32
    %c0_i32_1 = arith.constant 0 : i32
    %c0_i32_2 = arith.constant 0 : i32
    return %c0_i32, %c0_i32_0, %c0_i32_1 : i32, i32, i32
  }
  func.func @transform_13(%arg0: i32) -> (i32, i32, i32) {
    %c0_i32 = arith.constant 0 : i32
    %c0_i32_0 = arith.constant 0 : i32
    %c0_i32_1 = arith.constant 0 : i32
    %c0_i32_2 = arith.constant 0 : i32
    return %c0_i32, %c0_i32_0, %c0_i32_1 : i32, i32, i32
  }
  func.func @transform_14(%arg0: i32) -> (i32, i32) {
    %c0_i32 = arith.constant 0 : i32
    %c0_i32_0 = arith.constant 0 : i32
    %c0_i32_1 = arith.constant 0 : i32
    return %c0_i32, %c0_i32_0 : i32, i32
  }
  func.func @transform_15(%arg0: i32) -> (i32, i32) {
    %c0_i32 = arith.constant 0 : i32
    %c0_i32_0 = arith.constant 0 : i32
    %c0_i32_1 = arith.constant 0 : i32
    return %c0_i32, %c0_i32_0 : i32, i32
  }
  func.func @transform_16(%arg0: i32) -> (i32, i32) {
    %c0_i32 = arith.constant 0 : i32
    %c0_i32_0 = arith.constant 0 : i32
    %c0_i32_1 = arith.constant 0 : i32
    return %c0_i32, %c0_i32_0 : i32, i32
  }
  func.func @transform_17(%arg0: i32) -> (i32, i32) {
    %c0_i32 = arith.constant 0 : i32
    %c0_i32_0 = arith.constant 0 : i32
    %c0_i32_1 = arith.constant 0 : i32
    return %c0_i32, %c0_i32_0 : i32, i32
  }
  func.func @transform_18(%arg0: i32) -> (i32, i32) {
    %c0_i32 = arith.constant 0 : i32
    %c0_i32_0 = arith.constant 0 : i32
    %c0_i32_1 = arith.constant 0 : i32
    return %c0_i32, %c0_i32_0 : i32, i32
  }
  func.func @transform_19(%arg0: i32) -> (i32, i32) {
    %c0_i32 = arith.constant 0 : i32
    %c0_i32_0 = arith.constant 0 : i32
    %c0_i32_1 = arith.constant 0 : i32
    return %c0_i32, %c0_i32_0 : i32, i32
  }
  func.func @transform_20(%arg0: i32) -> (i32, i32) {
    %c0_i32 = arith.constant 0 : i32
    %c0_i32_0 = arith.constant 0 : i32
    %c0_i32_1 = arith.constant 0 : i32
    return %c0_i32, %c0_i32_0 : i32, i32
  }
  func.func @transform_21(%arg0: i32) -> (i32, i32, i32) {
    %c0_i32 = arith.constant 0 : i32
    %c0_i32_0 = arith.constant 0 : i32
    %c0_i32_1 = arith.constant 0 : i32
    return %arg0, %c0_i32, %c0_i32_0 : i32, i32, i32
  }
}

</mosaic_0001>

<bundles_post_ra>
// kernel: readnet_forward.2
= control target key start
LH: loop header
LB: loop body
LE: loop exit
PB: predicated region body
PF: predicated region fallthrough
CT: control target
= control target key end

     0   :  { %9 = vsyncpa [#allocation3], 0  ;;  %s208_s15 = smov [#allocation2]   ;;  %s272_s0 = inlined_call_operand.vmem [shape: f32[16,32], index: 0, kind: input, shape index: {}]   ;;  %s273_s1 = inlined_call_operand.vmem [shape: f32[16,4], index: 1, kind: input, shape index: {}]   ;;  %s274_s2 = inlined_call_operand.vmem [shape: bf16[32,32], index: 2, kind: input, shape index: {}]   ;;  %s275_s3 = inlined_call_operand.hbm [shape: bf16[4,32], index: 3, kind: input, shape index: {}]   ;;  %s276_s4 = inlined_call_operand.vmem [shape: f32[16,32], index: 4, kind: output, shape index: {}]  }
   0x1   :  { %s22_s16 = sshll.u32 %s208_s15, 4  ;;  %s184_s19 = scalar_lea.hbm %s275_s3, 32  ;;  %s23_s16 = int_to_ptr.vmem [resolvable:$true] %s22_s16 }
   0x2   :  { %p185_p0 = scmp.ne.s32.totalorder %s275_s3, %s184_s19  ;;  %p188_p1 = scmp.lt.u32.totalorder %s184_s19, %s275_s3 }
   0x4   :  { %p190_p2 = pnand %p188_p1, %p185_p0 }
   0x6   :  { %193 = shalt.err (!%p190_p2)
}
   0x7   :  { %s194_s24 = scalar_lea.vmem %s23_s16, 32  ;;  %p199_p4 = scmp.lt.s32.totalorder %s23_s16, %s23_s16 }
   0x8   :  { %p195_p3 = scmp.ne.s32.totalorder %s23_s16, %s194_s24  ;;  %p200_p5 = scmp.lt.s32.totalorder %s194_s24, %s194_s24 }
   0xa   :  { %p201_p6 = por %p200_p5, %p199_p4 }
   0xc   :  { %p202_p7 = pnand %p201_p6, %p195_p3 }
   0xe   :  { %205 = shalt.err (!%p202_p7)
}
   0xf   :  { %25 = dma.hbm_to_vmem [thread:$0]  %s275_s3, 32, %s23_s16, [#allocation3]  }
  0x10   :  { %206 = dma.done.wait [#allocation3], 32  }
  0x11   :  { %207 = vsyncadd [#allocation3], 4294967264  ;;  %v209_v0 = vmov 0.0   ;;  %vm210_vm0 = vmmov 0   ;;  %vm45_vm1 = vcmask 1041408   ;;  %v182_v1 = vld [vmem:[%s274_s2] sm:$0xff]  }
  0x12   :  { %169 = vmatprep.subr.bf16.mxu0 %v209_v0  ;;  %163 = vmatprep.subr.bf16.mxu1 %v209_v0  ;;  %v40_v2 = vld [vmem:[#allocation2] sm:$0x3]  ;;  %v38_v4 = vld [vmem:[%s273_s1 + $0x8] sm:$0xff]  ;;  %vm41_vm2 = vcmask 31744   ;;  %vm102_vm3 = vcmask 261120  }
  0x13   :  { %165 = vmatprep.mubr.msk.bf16.mxu1 %vm210_vm0, %v209_v0  ;;  %173 = vmatprep.mubr.msk.bf16.mxu0 %vm210_vm0, %v209_v0  ;;  %v37_v3 = vld [vmem:[%s273_s1] sm:$0xff]  ;;  %v47_v5 = vsel %vm45_vm1, %v40_v2, 0  ;;  %v183_v7 = vld [vmem:[%s274_s2 + $0x8] sm:$0xff]  }
  0x14   :  { %170 = vmatpush3.bf16.msra.mxu0 %v182_v1  ;;  %v39_v6 = vpack.c.bf16 %v38_v4, %v37_v3  ;;  %164 = vmatpush3.bf16.msra.mxu1 %v47_v5  ;;  %v30_v8 = vld [vmem:[%s272_s0] sm:$0xff]  ;;  %v31_v9 = vld [vmem:[%s272_s0 + $0x8] sm:$0xff] }
  0x15   :  { %171 = vmatprep.subr.bf16.mxu0 %v209_v0  ;;  %v32_v10 = vpack.c.bf16 %v31_v9, %v30_v8 }
  0x17   :  { %166 = vmatmul.mubr.msk.bf16.vlgmr.msra.gmra.mrb[0].mxu1 %vm41_vm2, %v39_v6 }
  0x18   :  { %172 = vmatpush3.bf16.msra.mxu0 %v183_v7 }
  0x1b   :  { %174 = vmatmul.mubr.msk.bf16.vlgmr.msra.gmra.mrb[0].mxu0 %vm102_vm3, %v32_v10 }
  0xea   :  { %v83_v11 = vpop.f32.mrb[0].mxu1 }
  0xeb   :  { %v167_v12 = vpop.f32.mrb[1].mxu1 }
  0xec   :  { %v86_v13 = vpop.f32.mrb[2].mxu1 }
  0xed   :  { %v168_v14 = vpop.f32.mrb[3].mxu1 }
  0xee   :  { %v140_v15 = vpop.f32.mrb[0].mxu0 }
  0xef   :  { %v141_v16 = vadd.f32 %v140_v15, %v83_v11  ;;  %v175_v17 = vpop.f32.mrb[1].mxu0 }
  0xf0   :  { %v143_v18 = vpop.f32.mrb[2].mxu0 }
  0xf1   :  { %147 = vst.msk [vmem:[%s276_s4] sm:$0xff] %vm102_vm3, %v141_v16  ;;  %v144_v19 = vadd.f32 %v143_v18, %v86_v13  ;;  %v176_v20 = vpop.f32.mrb[3].mxu0 }
  0xf3   :  { %148 = vst.msk [vmem:[%s276_s4 + $0x8] sm:$0xff] %vm102_vm3, %v144_v19 }
  0xf4   :  { %153 = vsyncpa [#allocation3], 1 }

// kernel: readnet_forward.3
= control target key start
LH: loop header
LB: loop body
LE: loop exit
PB: predicated region body
PF: predicated region fallthrough
CT: control target
= control target key end

     0   :  { %s2685_s0 = inlined_call_operand.vmem [shape: f32[2,8,32], index: 0, kind: input, shape index: {}]   ;;  %s2686_s1 = inlined_call_operand.vmem [shape: f32[2,1,4], index: 1, kind: input, shape index: {}]   ;;  %s2687_s2 = inlined_call_operand.vmem [shape: f32[8,32], index: 2, kind: input, shape index: {}]   ;;  %s2688_s3 = inlined_call_operand.vmem [shape: bf16[2,32,32], index: 3, kind: input, shape index: {}]   ;;  %s2689_s4 = inlined_call_operand.vmem [shape: bf16[2,32,32], index: 4, kind: input, shape index: {}]   ;;  %s2690_s5 = inlined_call_operand.vmem [shape: bf16[2,32,32], index: 5, kind: input, shape index: {}]   ;;  %s2691_s6 = inlined_call_operand.hbm [shape: f32[2,1,32], index: 6, kind: input, shape index: {}]   ;;  %s2692_s7 = inlined_call_operand.hbm [shape: f32[2,1,32], index: 7, kind: input, shape index: {}]   ;;  %s2693_s8 = inlined_call_operand.vmem [shape: bf16[2,32,32], index: 8, kind: input, shape index: {}]   ;;  %s2694_s9 = inlined_call_operand.hbm [shape: f32[2,1,32], index: 9, kind: input, shape index: {}]   ;;  %s2695_s10 = inlined_call_operand.vmem [shape: bf16[2,32,32], index: 10, kind: input, shape index: {}]   ;;  %s2696_s11 = inlined_call_operand.hbm [shape: f32[2,1,32], index: 11, kind: input, shape index: {}]   ;;  %s2697_s12 = inlined_call_operand.hbm [shape: f32[2,1,32], index: 12, kind: input, shape index: {}]   ;;  %s2698_s13 = inlined_call_operand.hbm [shape: f32[2,1,32], index: 13, kind: input, shape index: {}]   ;;  %s2699_s14 = inlined_call_operand.hbm [shape: bf16[32,32], index: 14, kind: input, shape index: {}]   ;;  %s2700_s15 = inlined_call_operand.hbm [shape: f32[1,32], index: 15, kind: input, shape index: {}]   ;;  %s2701_s16 = inlined_call_operand.hbm [shape: f32[1,32], index: 16, kind: input, shape index: {}]   ;;  %s2702_s17 = inlined_call_operand.hbm [shape: bf16[32,36], index: 17, kind: input, shape index: {}]   ;;  %s2703_s18 = inlined_call_operand.hbm [shape: bf16[4,36], index: 18, kind: input, shape index: {}]   ;;  %s2704_s19 = inlined_call_operand.hbm [shape: f32[1,36], index: 19, kind: input, shape index: {}]   ;;  %s2705_s20 = inlined_call_operand.<no memory space> [shape: f32[1,1], index: 20, kind: input, shape index: {}]   ;;  %s2706_s21 = inlined_call_operand.hbm [shape: f32[1,1,2], index: 21, kind: output, shape index: {}]  }
   0x1   :  { %2709 = sst [smem:[#allocation32_spill]] %s2685_s0  ;;  %v26_v0 = vstv %s2705_s20 }
   0x2   :  { %2710 = sst [smem:[#allocation33_spill]] %s2686_s1  ;;  %27 = vst [vmem:[#allocation2] sm:$0x1] %v26_v0 }
   0x3   :  { %2711 = sst [smem:[#allocation34_spill]] %s2687_s2 }
   0x4   :  { %2712 = sst [smem:[#allocation35_spill]] %s2688_s3 }
   0x5   :  { %2713 = sst [smem:[#allocation36_spill]] %s2689_s4 }
   0x6   :  { %2714 = sst [smem:[#allocation37_spill]] %s2690_s5 }
   0x7   :  { %28 = vsyncpa [#allocation4], 0 }
   0x8   :  { %29 = vsyncpa [#allocation7], 0 }
   0x9   :  { %30 = vsyncpa [#allocation10], 0 }
   0xa   :  { %31 = vsyncpa [#allocation13], 0 }
   0xb   :  { %32 = vsyncpa [#allocation16], 0 }
   0xc   :  { %33 = vsyncpa [#allocation19], 0 }
   0xd   :  { %34 = vsyncpa [#allocation22], 0 }
   0xe   :  { %35 = vsyncpa [#allocation5], 0  ;;  %s2118_s26 = smov [#allocation6]   ;;  %s2119_s3 = smov [#allocation9]  }
   0xf   :  { %s65_s27 = sshll.u32 %s2118_s26, 4  ;;  %s93_s28 = sshll.u32 %s2119_s3, 4  ;;  %s66_s27 = int_to_ptr.vmem [resolvable:$true] %s65_s27  ;;  %s2253_s28 = int_to_ptr.vmem [resolvable:$true] %s93_s28 }
  0x10   :  { %s1792_s20 = scalar_lea.hbm %s2692_s7, 32 }
  0x11   :  { %p1793_p0 = scmp.ne.s32.totalorder %s2692_s7, %s1792_s20  ;;  %p1796_p1 = scmp.lt.u32.totalorder %s1792_s20, %s2692_s7 }
  0x13   :  { %p1798_p2 = pnand %p1796_p1, %p1793_p0 }
  0x15   :  { %1801 = shalt.err (!%p1798_p2)
}
  0x16   :  { %s1802_s23 = scalar_lea.vmem %s66_s27, 32  ;;  %p1807_p4 = scmp.lt.s32.totalorder %s66_s27, %s66_s27 }
  0x17   :  { %p1803_p3 = scmp.ne.s32.totalorder %s66_s27, %s1802_s23  ;;  %p1808_p5 = scmp.lt.s32.totalorder %s1802_s23, %s1802_s23 }
  0x19   :  { %p1809_p6 = por %p1808_p5, %p1807_p4 }
  0x1b   :  { %p1810_p7 = pnand %p1809_p6, %p1803_p3 }
  0x1d   :  { %1813 = shalt.err (!%p1810_p7)
}
  0x1e   :  { %s2120_s1 = smov 16   ;;  %s2121_s24 = smov 1  }
  0x1f   :  { %71 = dma.hbm_to_vmem [thread:$0]  %s2692_s7, 32, %s66_s27, [#allocation7], %s2120_s1, %s2120_s1, %s2121_s24  }
  0x20   :  { %s1814_s29 = scalar_lea.hbm %s2696_s11, 32 }
  0x21   :  { %p1815_p8 = scmp.ne.s32.totalorder %s2696_s11, %s1814_s29  ;;  %p1818_p9 = scmp.lt.u32.totalorder %s1814_s29, %s2696_s11 }
  0x23   :  { %p1820_p10 = pnand %p1818_p9, %p1815_p8 }
  0x25   :  { %1823 = shalt.err (!%p1820_p10)
}
  0x26   :  { %s1824_s5 = scalar_lea.vmem %s2253_s28, 32  ;;  %p1829_p12 = scmp.lt.s32.totalorder %s2253_s28, %s2253_s28 }
  0x27   :  { %p1825_p11 = scmp.ne.s32.totalorder %s2253_s28, %s1824_s5  ;;  %p1830_p13 = scmp.lt.s32.totalorder %s1824_s5, %s1824_s5 }
  0x29   :  { %p1831_p0 = por %p1830_p13, %p1829_p12 }
  0x2b   :  { %p1832_p1 = pnand %p1831_p0, %p1825_p11 }
  0x2d   :  { %1835 = shalt.err (!%p1832_p1)
}
  0x2e   :  { %99 = dma.hbm_to_vmem [thread:$0]  %s2696_s11, 32, %s2253_s28, [#allocation10], %s2120_s1, %s2120_s1, %s2121_s24  }
  0x2f   :  { %s2122_s22 = smov [#allocation12]   ;;  %s2123_s2 = smov [#allocation15]  }
  0x30   :  { %s117_s23 = sshll.u32 %s2122_s22, 4  ;;  %s142_s25 = sshll.u32 %s2123_s2, 4  ;;  %s118_s23 = int_to_ptr.vmem [resolvable:$true] %s117_s23  ;;  %s143_s25 = int_to_ptr.vmem [resolvable:$true] %s142_s25 }
  0x31   :  { %s1836_s29 = scalar_lea.hbm %s2698_s13, 32 }
  0x32   :  { %p1837_p2 = scmp.ne.s32.totalorder %s2698_s13, %s1836_s29  ;;  %p1840_p3 = scmp.lt.u32.totalorder %s1836_s29, %s2698_s13 }
  0x34   :  { %p1842_p4 = pnand %p1840_p3, %p1837_p2 }
  0x36   :  { %1845 = shalt.err (!%p1842_p4)
}
  0x37   :  { %s1846_s11 = scalar_lea.vmem %s118_s23, 32  ;;  %p1851_p6 = scmp.lt.s32.totalorder %s118_s23, %s118_s23 }
  0x38   :  { %p1847_p5 = scmp.ne.s32.totalorder %s118_s23, %s1846_s11  ;;  %p1852_p7 = scmp.lt.s32.totalorder %s1846_s11, %s1846_s11 }
  0x3a   :  { %p1853_p8 = por %p1852_p7, %p1851_p6 }
  0x3c   :  { %p1854_p9 = pnand %p1853_p8, %p1847_p5 }
  0x3e   :  { %1857 = shalt.err (!%p1854_p9)
}
  0x3f   :  { %123 = dma.hbm_to_vmem [thread:$0]  %s2698_s13, 32, %s118_s23, [#allocation13], %s2120_s1, %s2120_s1, %s2121_s24  }
  0x40   :  { %s1858_s22 = scalar_lea.hbm %s2700_s15, 16 }
  0x41   :  { %p1859_p10 = scmp.ne.s32.totalorder %s2700_s15, %s1858_s22  ;;  %p1862_p11 = scmp.lt.u32.totalorder %s1858_s22, %s2700_s15 }
  0x43   :  { %p1864_p12 = pnand %p1862_p11, %p1859_p10 }
  0x45   :  { %1867 = shalt.err (!%p1864_p12)
}
  0x46   :  { %s1868_s0 = scalar_lea.vmem %s143_s25, 16  ;;  %s1872_s20 = scalar_lea.vmem %s143_s25, 32 }
  0x47   :  { %p1869_p13 = scmp.ne.s32.totalorder %s143_s25, %s1868_s0  ;;  %p1873_p0 = scmp.lt.s32.totalorder %s143_s25, %s143_s25 }
  0x48   :  { %p1874_p1 = scmp.lt.s32.totalorder %s1872_s20, %s1868_s0 }
  0x4a   :  { %p1875_p2 = por %p1874_p1, %p1873_p0 }
  0x4c   :  { %p1876_p3 = pnand %p1875_p2, %p1869_p13 }
  0x4e   :  { %1879 = shalt.err (!%p1876_p3)
}
  0x4f   :  { %145 = dma.hbm_to_vmem [thread:$0]  %s2700_s15, 16, %s143_s25, [#allocation16]  }
  0x50   :  { %s2124_s4 = smov [#allocation18]   ;;  %s2125_s11 = smov [#allocation3]  }
  0x51   :  { %s161_s30 = sshll.u32 %s2124_s4, 4  ;;  %s53_s28 = sshll.u32 %s2125_s11, 4  ;;  %s162_s30 = int_to_ptr.vmem [resolvable:$true] %s161_s30  ;;  %s2317_s28 = int_to_ptr.vmem [resolvable:$true] %s53_s28 }
  0x52   :  { %s1880_s27 = scalar_lea.hbm %s2702_s17, 256 }
  0x53   :  { %p1881_p4 = scmp.ne.s32.totalorder %s2702_s17, %s1880_s27  ;;  %p1884_p5 = scmp.lt.u32.totalorder %s1880_s27, %s2702_s17 }
  0x55   :  { %p1886_p6 = pnand %p1884_p5, %p1881_p4 }
  0x57   :  { %1889 = shalt.err (!%p1886_p6)
}
  0x58   :  { %s1890_s15 = scalar_lea.vmem %s162_s30, 256  ;;  %p1895_p8 = scmp.lt.s32.totalorder %s162_s30, %s162_s30 }
  0x59   :  { %p1891_p7 = scmp.ne.s32.totalorder %s162_s30, %s1890_s15  ;;  %p1896_p9 = scmp.lt.s32.totalorder %s1890_s15, %s1890_s15 }
  0x5b   :  { %p1897_p10 = por %p1896_p9, %p1895_p8 }
  0x5d   :  { %p1898_p11 = pnand %p1897_p10, %p1891_p7 }
  0x5f   :  { %1901 = shalt.err (!%p1898_p11)
}
  0x60   :  { %s2126_s25 = smov 64   ;;  %s2127_s29 = smov 4  }
  0x61   :  { %167 = dma.hbm_to_vmem [thread:$0]  %s2702_s17, 256, %s162_s30, [#allocation19], %s2126_s25, %s2126_s25, %s2127_s29  }
  0x62   :  { %s1902_s4 = scalar_lea.hbm %s2691_s6, 32 }
  0x63   :  { %p1903_p12 = scmp.ne.s32.totalorder %s2691_s6, %s1902_s4  ;;  %p1906_p13 = scmp.lt.u32.totalorder %s1902_s4, %s2691_s6 }
  0x65   :  { %p1908_p0 = pnand %p1906_p13, %p1903_p12 }
  0x67   :  { %1911 = shalt.err (!%p1908_p0)
}
  0x68   :  { %s1912_s22 = scalar_lea.vmem %s2317_s28, 32  ;;  %p1917_p2 = scmp.lt.s32.totalorder %s2317_s28, %s2317_s28 }
  0x69   :  { %p1913_p1 = scmp.ne.s32.totalorder %s2317_s28, %s1912_s22  ;;  %p1918_p3 = scmp.lt.s32.totalorder %s1912_s22, %s1912_s22 }
  0x6b   :  { %p1919_p4 = por %p1918_p3, %p1917_p2 }
  0x6d   :  { %p1920_p5 = pnand %p1919_p4, %p1913_p1 }
  0x6f   :  { %1923 = shalt.err (!%p1920_p5)
}
  0x70   :  { %59 = dma.hbm_to_vmem [thread:$0]  %s2691_s6, 32, %s2317_s28, [#allocation4], %s2120_s1, %s2120_s1, %s2121_s24  }
  0x71   :  { %s2128_s2 = smov [#allocation8]   ;;  %s2129_s3 = smov [#allocation11]  }
  0x72   :  { %s79_s26 = sshll.u32 %s2128_s2, 4  ;;  %s105_s15 = sshll.u32 %s2129_s3, 4  ;;  %s80_s26 = int_to_ptr.vmem [resolvable:$true] %s79_s26  ;;  %s2354_s15 = int_to_ptr.vmem [resolvable:$true] %s105_s15 }
  0x73   :  { %s1924_s13 = scalar_lea.hbm %s2694_s9, 32 }
  0x74   :  { %p1925_p6 = scmp.ne.s32.totalorder %s2694_s9, %s1924_s13  ;;  %p1928_p7 = scmp.lt.u32.totalorder %s1924_s13, %s2694_s9 }
  0x76   :  { %p1930_p8 = pnand %p1928_p7, %p1925_p6 }
  0x78   :  { %1933 = shalt.err (!%p1930_p8)
}
  0x79   :  { %s1934_s6 = scalar_lea.vmem %s80_s26, 32  ;;  %p1939_p10 = scmp.lt.s32.totalorder %s80_s26, %s80_s26 }
  0x7a   :  { %p1935_p9 = scmp.ne.s32.totalorder %s80_s26, %s1934_s6  ;;  %p1940_p11 = scmp.lt.s32.totalorder %s1934_s6, %s1934_s6 }
  0x7c   :  { %p1941_p12 = por %p1940_p11, %p1939_p10 }
  0x7e   :  { %p1942_p13 = pnand %p1941_p12, %p1935_p9 }
  0x80   :  { %1945 = shalt.err (!%p1942_p13)
}
  0x81   :  { %85 = dma.hbm_to_vmem [thread:$0]  %s2694_s9, 32, %s80_s26, [#allocation7], %s2120_s1, %s2120_s1, %s2121_s24  }
  0x82   :  { %s1946_s17 = scalar_lea.hbm %s2697_s12, 32 }
  0x83   :  { %p1947_p0 = scmp.ne.s32.totalorder %s2697_s12, %s1946_s17  ;;  %p1950_p1 = scmp.lt.u32.totalorder %s1946_s17, %s2697_s12 }
  0x85   :  { %p1952_p2 = pnand %p1950_p1, %p1947_p0 }
  0x87   :  { %1955 = shalt.err (!%p1952_p2)
}
  0x88   :  { %s1956_s20 = scalar_lea.vmem %s2354_s15, 32  ;;  %p1961_p4 = scmp.lt.s32.totalorder %s2354_s15, %s2354_s15 }
  0x89   :  { %p1957_p3 = scmp.ne.s32.totalorder %s2354_s15, %s1956_s20  ;;  %p1962_p5 = scmp.lt.s32.totalorder %s1956_s20, %s1956_s20 }
  0x8b   :  { %p1963_p6 = por %p1962_p5, %p1961_p4 }
  0x8d   :  { %p1964_p7 = pnand %p1963_p6, %p1957_p3 }
  0x8f   :  { %1967 = shalt.err (!%p1964_p7)
}
  0x90   :  { %111 = dma.hbm_to_vmem [thread:$0]  %s2697_s12, 32, %s2354_s15, [#allocation10], %s2120_s1, %s2120_s1, %s2121_s24  }
  0x91   :  { %s2130_s13 = smov [#allocation14]   ;;  %s2131_s4 = smov [#allocation17]  }
  0x92   :  { %s129_s23 = sshll.u32 %s2130_s13, 4  ;;  %s152_s11 = sshll.u32 %s2131_s4, 4  ;;  %s130_s23 = int_to_ptr.vmem [resolvable:$true] %s129_s23  ;;  %s153_s11 = int_to_ptr.vmem [resolvable:$true] %s152_s11 }
  0x93   :  { %s1968_s28 = scalar_lea.hbm %s2699_s14, 256 }
  0x94   :  { %p1969_p8 = scmp.ne.s32.totalorder %s2699_s14, %s1968_s28  ;;  %p1972_p9 = scmp.lt.u32.totalorder %s1968_s28, %s2699_s14 }
  0x96   :  { %p1974_p10 = pnand %p1972_p9, %p1969_p8 }
  0x98   :  { %1977 = shalt.err (!%p1974_p10)
}
  0x99   :  { %s1978_s12 = scalar_lea.vmem %s130_s23, 256  ;;  %p1983_p12 = scmp.lt.s32.totalorder %s130_s23, %s130_s23 }
  0x9a   :  { %p1979_p11 = scmp.ne.s32.totalorder %s130_s23, %s1978_s12  ;;  %p1984_p13 = scmp.lt.s32.totalorder %s1978_s12, %s1978_s12 }
  0x9c   :  { %p1985_p0 = por %p1984_p13, %p1983_p12 }
  0x9e   :  { %p1986_p1 = pnand %p1985_p0, %p1979_p11 }
  0xa0   :  { %1989 = shalt.err (!%p1986_p1)
}
  0xa1   :  { %135 = dma.hbm_to_vmem [thread:$0]  %s2699_s14, 256, %s130_s23, [#allocation13], %s2126_s25, %s2126_s25, %s2127_s29  }
  0xa2   :  { %s1990_s2 = scalar_lea.hbm %s2701_s16, 16 }
  0xa3   :  { %p1991_p2 = scmp.ne.s32.totalorder %s2701_s16, %s1990_s2  ;;  %p1994_p3 = scmp.lt.u32.totalorder %s1990_s2, %s2701_s16 }
  0xa5   :  { %p1996_p4 = pnand %p1994_p3, %p1991_p2 }
  0xa7   :  { %1999 = shalt.err (!%p1996_p4)
}
  0xa8   :  { %s2000_s26 = scalar_lea.vmem %s153_s11, 16  ;;  %s2004_s13 = scalar_lea.vmem %s153_s11, 32 }
  0xa9   :  { %p2001_p5 = scmp.ne.s32.totalorder %s153_s11, %s2000_s26  ;;  %p2005_p6 = scmp.lt.s32.totalorder %s153_s11, %s153_s11 }
  0xaa   :  { %p2006_p7 = scmp.lt.s32.totalorder %s2004_s13, %s2000_s26 }
  0xac   :  { %p2007_p8 = por %p2006_p7, %p2005_p6 }
  0xae   :  { %p2008_p9 = pnand %p2007_p8, %p2001_p5 }
  0xb0   :  { %2011 = shalt.err (!%p2008_p9)
}
  0xb1   :  { %155 = dma.hbm_to_vmem [thread:$0]  %s2701_s16, 16, %s153_s11, [#allocation16]  }
  0xb2   :  { %s2132_s29 = smov [#allocation20]   ;;  %s2133_s4 = smov [#allocation21]  }
  0xb3   :  { %s174_s23 = sshll.u32 %s2132_s29, 4  ;;  %s184_s5 = sshll.u32 %s2133_s4, 4  ;;  %s175_s23 = int_to_ptr.vmem [resolvable:$true] %s174_s23  ;;  %s185_s5 = int_to_ptr.vmem [resolvable:$true] %s184_s5 }
  0xb4   :  { %s2012_s7 = scalar_lea.hbm %s2703_s18, 32 }
  0xb5   :  { %p2013_p10 = scmp.ne.s32.totalorder %s2703_s18, %s2012_s7  ;;  %p2016_p11 = scmp.lt.u32.totalorder %s2012_s7, %s2703_s18 }
  0xb7   :  { %p2018_p12 = pnand %p2016_p11, %p2013_p10 }
  0xb9   :  { %2021 = shalt.err (!%p2018_p12)
}
  0xba   :  { %s2022_s16 = scalar_lea.vmem %s175_s23, 32  ;;  %p2027_p0 = scmp.lt.s32.totalorder %s175_s23, %s175_s23 }
  0xbb   :  { %p2023_p13 = scmp.ne.s32.totalorder %s175_s23, %s2022_s16  ;;  %p2028_p1 = scmp.lt.s32.totalorder %s2022_s16, %s2022_s16 }
  0xbd   :  { %p2029_p2 = por %p2028_p1, %p2027_p0 }
  0xbf   :  { %p2030_p3 = pnand %p2029_p2, %p2023_p13 }
  0xc1   :  { %2033 = shalt.err (!%p2030_p3)
}
  0xc2   :  { %177 = dma.hbm_to_vmem [thread:$0]  %s2703_s18, 32, %s175_s23, [#allocation19]  }
  0xc3   :  { %s2034_s30 = scalar_lea.hbm %s2704_s19, 16 }
  0xc4   :  { %p2035_p4 = scmp.ne.s32.totalorder %s2704_s19, %s2034_s30  ;;  %p2038_p5 = scmp.lt.u32.totalorder %s2034_s30, %s2704_s19 }
  0xc6   :  { %p2040_p6 = pnand %p2038_p5, %p2035_p4 }
  0xc8   :  { %2043 = shalt.err (!%p2040_p6)
}
  0xc9   :  { %s2044_s9 = scalar_lea.vmem %s185_s5, 16  ;;  %s2048_s26 = scalar_lea.vmem %s185_s5, 32 }
  0xca   :  { %p2045_p7 = scmp.ne.s32.totalorder %s185_s5, %s2044_s9  ;;  %p2049_p8 = scmp.lt.s32.totalorder %s185_s5, %s185_s5 }
  0xcb   :  { %p2050_p9 = scmp.lt.s32.totalorder %s2048_s26, %s2044_s9 }
  0xcd   :  { %p2051_p10 = por %p2050_p9, %p2049_p8 }
  0xcf   :  { %p2052_p11 = pnand %p2051_p10, %p2045_p7 }
  0xd1   :  { %2055 = shalt.err (!%p2052_p11)
}
  0xd2   :  { %187 = dma.hbm_to_vmem [thread:$0]  %s2704_s19, 16, %s185_s5, [#allocation22]  }
  0xd3   :  { %2090 = dma.done.wait [#allocation4], 32  }
  0xd4   :  { %2091 = vsyncadd [#allocation4], 4294967264 }
  0xd5   :  { %2092 = dma.done.wait [#allocation7], 64  }
  0xd6   :  { %2093 = vsyncadd [#allocation7], 4294967232 }
  0xd7   :  { %2094 = dma.done.wait [#allocation10], 64  }
  0xd8   :  { %2095 = vsyncadd [#allocation10], 4294967232 }
  0xd9   :  { %2096 = dma.done.wait [#allocation13], 288  }
  0xda   :  { %2097 = vsyncadd [#allocation13], 4294967008 }
  0xdb   :  { %2098 = dma.done.wait [#allocation16], 32  }
  0xdc   :  { %2099 = vsyncadd [#allocation16], 4294967264 }
  0xdd   :  { %2100 = dma.done.wait [#allocation19], 288  }
  0xde   :  { %2101 = vsyncadd [#allocation19], 4294967008 }
  0xdf   :  { %2102 = dma.done.wait [#allocation22], 16  }
  0xe0   :  { %2103 = vsyncadd [#allocation22], 4294967280  ;;  %v232_v1 = vlaneseq  ;;  %s2717_s25 = sld [smem:[#allocation32_spill]]  ;;  %s2718_s6 = sld [smem:[#allocation34_spill]] }
  0xe1   :  { %s2465_s28 = smov 0  }
  0xe2   :  { %v2443_v2 = vand.u32 127, %v232_v1 }
  0xe4   :  { %vm235_vm0 = vcmp.lt.s32.totalorder %v2443_v2, 16  ;;  %vm237_vm1 = vcmp.ge.s32.totalorder %v2443_v2, 16  ;;  %vm238_vm2 = vcmp.lt.s32.totalorder %v2443_v2, 32 }
  0xe5   :  { %vm2448_vm3 = vmand %vm237_vm1, %vm238_vm2 }
  0xe6   :  { %v227_v4 = vld [vmem:[%s2717_s25] sm:$0xff]  ;;  %v228_v5 = vld [vmem:[%s2717_s25 + $0x8] sm:$0xff] }
  0xe7   :  { %v229_v6 = vld [vmem:[%s2718_s6] sm:$0xff] }
  0xe8   :  { %v230_v7 = vadd.f32 %v229_v6, %v227_v4   ;;  %v231_v8 = vadd.f32 %v229_v6, %v228_v5  }
  0xe9 LB: > { %v2134_v9 = vmov 0.0   ;;  %s2479_s7 = sshll.u32 %s2116_s28, 4  ;;  %vm2135_vm4 = vmmov 0   ;;  %s2719_s17 = sld [smem:[#allocation36_spill]]  ;;  %v248_v14 = vpack.c.bf16 %v2108_v8, %v2112_v7  ;;  %vm268_vm5 = vcmask 261120   ;;  %vm2519_vm6 = vmpackc.low %vm235_vm0, %vm235_vm0  ;;  %s2116_s28 = sphi %s2465_s28, %s245_s28   ;;  %v2112_v7 = vphi %v230_v7, %v2727_v7   ;;  %v2108_v8 = vphi %v231_v8, %v2726_v8  }
  0xea   : > { %1586 = vmatprep.subr.bf16.mxu1 %v2134_v9  ;;  %1578 = vmatprep.subr.bf16.mxu0 %v2134_v9  ;;  %s2720_s1 = sld [smem:[#allocation35_spill]]  ;;  %s2721_s2 = sld [smem:[#allocation37_spill]]  ;;  %vm2531_vm7 = vmpackc.low %vm2448_vm3, %vm2448_vm3  ;;  %vm685_vm8 = vcmask 1043456   ;;  %vm536_vm9 = vcmask 64512  }
  0xeb   : > { %1590 = vmatprep.mubr.msk.bf16.mxu1 %vm2135_vm4, %v2134_v9  ;;  %1582 = vmatprep.mubr.msk.bf16.mxu0 %vm2135_vm4, %v2134_v9  ;;  %s918_s9 = scalar_lea.vmem %s2693_s8, %s2479_s7  ;;  %s869_s26 = scalar_lea.vmem [#allocation3], %s2116_s28 }
  0xec   : > { %s871_s18 = scalar_lea.vmem [#allocation6], %s2116_s28  ;;  %s991_s14 = scalar_lea.vmem %s2695_s10, %s2479_s7 }
  0xed   : > { %s923_s25 = scalar_lea.vmem [#allocation8], %s2116_s28  ;;  %s996_s29 = scalar_lea.vmem [#allocation9], %s2116_s28 }
  0xee   : > { %s1062_s23 = scalar_lea.vmem [#allocation11], %s2116_s28  ;;  %s1064_s4 = scalar_lea.vmem [#allocation12], %s2116_s28 }
  0xef   : > { %s314_s12 = scalar_lea.vmem %s2719_s17, %s2479_s7  ;;  %s245_s28 = sadd.s32 1, %s2116_s28  }
  0xf0   : > { %s251_s24 = scalar_lea.vmem %s2720_s1, %s2479_s7  ;;  %v1740_v10 = vld [vmem:[%s314_s12] sm:$0xff]   ;;  %v1741_v11 = vld [vmem:[%s314_s12 + $0x8] sm:$0xff]   ;;  %s373_s3 = scalar_lea.vmem %s2721_s2, %s2479_s7 }
  0xf1   : > { %1587 = vmatpush3.bf16.msra.mxu1 %v1740_v10  ;;  %v1742_v12 = vld [vmem:[%s251_s24] sm:$0xff]   ;;  %v1743_v13 = vld [vmem:[%s251_s24 + $0x8] sm:$0xff]   ;;  %p242_p12 = scmp.ge.s32.totalorder %s245_s28, 2  }
  0xf2   : > { %1588 = vmatprep.subr.bf16.mxu1 %v2134_v9  ;;  %1579 = vmatpush3.bf16.msra.mxu0 %v1742_v12  ;;  %v1744_v15 = vld [vmem:[%s373_s3] sm:$0xff]   ;;  %v1745_v16 = vld [vmem:[%s373_s3 + $0x8] sm:$0xff]   ;;  %vm2137_vm10 = vmmov (%p242_p12), 0   ;;  %v1524_v3 = vld [vmem:[#allocation15] ss:$0 sm:$0xff] (%p242_p12)  ;;  %vm1204_vm11 = vcmask (%p242_p12), 1041409  }
  0xf3   : > { %1580 = vmatprep.subr.bf16.mxu0 %v2134_v9  ;;  %vm1207_vm12 = vcmask (%p242_p12), 58368   ;;  %s2728_s5 = sld [smem:[#allocation33_spill]] (%p242_p12)  ;;  %vm1311_vm13 = vcmask (%p242_p12), 1041408   ;;  %vm1307_vm14 = vcmask (%p242_p12), 31744   ;;  %vm1425_vm15 = vcmask (%p242_p12), 287744   ;;  %s2139_s27 = smov (%p242_p12), [#allocation23]  }
  0xf4   :  { %s1447_s22 = sshll.u32 (%p242_p12), %s2139_s27, 4  ;;  %vm1439_vm0 = vcmask (%p242_p12), 8192   ;;  %s1448_s22 = int_to_ptr.vmem [resolvable:$true] %s1447_s22 }
  0xf5   : > { %1589 = vmatpush3.bf16.msra.mxu1 %v1741_v11  ;;  %s2056_s17 = scalar_lea.vmem (%p242_p12), %s1448_s22, 16  ;;  %s2060_s12 = scalar_lea.vmem (%p242_p12), %s1448_s22, 32 }
  0xf6   : > { %1602 = vmatprep.subr.bf16.mxu1 %v2134_v9  ;;  %1581 = vmatpush3.bf16.msra.mxu0 %v1743_v13  ;;  %p2057_p13 = scmp.ne.s32.totalorder (%p242_p12), %s1448_s22, %s2056_s17  ;;  %p2061_p0 = scmp.lt.s32.totalorder (%p242_p12), %s1448_s22, %s1448_s22 }
  0xf7   : > { %1594 = vmatprep.subr.bf16.mxu0 %v2134_v9  ;;  %p2062_p1 = scmp.lt.s32.totalorder (%p242_p12), %s2060_s12, %s2056_s17 }
  0xf8   : > { %1591 = vmatmul.mubr.msk.bf16.vlgmr.msra.gmra.mrb[0].mxu1 %vm268_vm5, %v248_v14 }
  0xf9   : > { %1604 = vmatprep.mubr.msk.bf16.mxu1 %vm2135_vm4, %v2134_v9  ;;  %1583 = vmatmul.mubr.msk.bf16.vlgmr.msra.gmra.mrb[0].mxu0 %vm268_vm5, %v248_v14  ;;  %p2063_p2 = por (%p242_p12), %p2062_p1, %p2061_p0 }
  0xfa   : > { %1595 = vmatpush3.bf16.msra.mxu0 %v1744_v15  ;;  %1598 = vmatprep.mubr.msk.bf16.mxu0 %vm2135_vm4, %v2134_v9 }
  0xfb   : > { %1596 = vmatprep.subr.bf16.mxu0 %v2134_v9  ;;  %p2064_p3 = pnand (%p242_p12), %p2063_p2, %p2057_p13 }
  0xfe   : > { %1597 = vmatpush3.bf16.msra.mxu0 %v1745_v16 }
  0xff   : > { %1608 = vmatprep.subr.bf16.mxu0 %v2134_v9 }
 0x101   : > { %1599 = vmatmul.mubr.msk.bf16.vlgmr.msra.gmra.mrb[4].mxu0 %vm268_vm5, %v248_v14 }
 0x102   : > { %1610 = vmatprep.mubr.msk.bf16.mxu0 %vm2135_vm4, %v2134_v9 }
 0x1cb   : > { %v365_v17 = vpop.f32.mrb[0].mxu1 }
 0x1cc   : > { %v433_v18 = vpack.c.bf16 %v365_v17, %v365_v17  ;;  %v1592_v19 = vpop.f32.mrb[1].mxu1  ;;  %v306_v21 = vpop.f32.mrb[0].mxu0 }
 0x1cd   : > { %v368_v20 = vpop.f32.mrb[2].mxu1  ;;  %v1584_v25 = vpop.f32.mrb[1].mxu0  ;;  %v431_v26 = vpack.c.bf16 %v306_v21, %v306_v21 }
 0x1ce   : > { %v446_v22 = vsel %vm268_vm5, %v433_v18, 0  ;;  %v434_v23 = vpack.c.bf16 %v368_v20, %v368_v20  ;;  %v1593_v24 = vpop.f32.mrb[3].mxu1  ;;  %v309_v27 = vpop.f32.mrb[2].mxu0 }
 0x1cf   : > { %1603 = vmatpush3.bf16.xpose.msra.mxu1 %v446_v22  ;;  %v1585_v30 = vpop.f32.mrb[3].mxu0  ;;  %v440_v31 = vsel %vm2519_vm6, %v431_v26, 0  ;;  %v432_v32 = vpack.c.bf16 %v309_v27, %v309_v27  ;;  %v566_v45 = vsel %vm2531_vm7, %v431_v26, 0 }
 0x1d0   : > { %v492_v28 = vsel %vm268_vm5, %v434_v23, 0  ;;  %1614 = vmatprep.subr.bf16.mxu1 %v2134_v9 }
 0x1d1   : > { %1609 = vmatpush3.bf16.xpose.msra.mxu0 %v492_v28  ;;  %v441_v37 = vsel %vm2519_vm6, %v432_v32, 0  ;;  %v567_v46 = vsel %vm2531_vm7, %v432_v32, 0 }
 0x1d2   : > { %1620 = vmatprep.subr.bf16.mxu0 %v2134_v9 }
 0x1d4   : > { %v424_v33 = vpop.f32.mrb[4].mxu0 }
 0x1d5   : > { %v435_v34 = vpack.c.bf16 %v424_v33, %v424_v33  ;;  %v1600_v35 = vpop.f32.mrb[5].mxu0 }
 0x1d6   : > { %1605 = vmatmul.mubr.msk.bf16.vlgmr.msra.gmra.mrb[4].mxu1 %vm268_vm5, %v440_v31  ;;  %v427_v38 = vpop.f32.mrb[6].mxu0 }
 0x1d7   : > { %1615 = vmatpush3.bf16.xpose.msra.mxu1 %v446_v22  ;;  %1616 = vmatprep.mubr.msk.bf16.mxu1 %vm2135_vm4, %v2134_v9  ;;  %v561_v39 = vsel %vm2519_vm6, %v435_v34, 0  ;;  %v680_v40 = vsel %vm2531_vm7, %v435_v34, 0  ;;  %v436_v41 = vpack.c.bf16 %v427_v38, %v427_v38  ;;  %v1601_v42 = vpop.f32.mrb[7].mxu0 }
 0x1d8   : > { %1611 = vmatmul.mubr.msk.bf16.vlgmr.msra.gmra.mrb[8].mxu0 %vm268_vm5, %v441_v37  ;;  %1626 = vmatprep.subr.bf16.mxu1 %v2134_v9  ;;  %v687_v47 = vsel %vm685_vm8, %v680_v40, 0  ;;  %v2562_v49 = vsel %vm685_vm8, %v561_v39, 0 }
 0x1d9   : > { %1621 = vmatpush3.bf16.xpose.msra.mxu0 %v492_v28  ;;  %1622 = vmatprep.mubr.msk.bf16.mxu0 %vm2135_vm4, %v2134_v9  ;;  %v562_v43 = vsel %vm2519_vm6, %v436_v41, 0  ;;  %v681_v44 = vsel %vm2531_vm7, %v436_v41, 0 }
 0x1da   : > { %1632 = vmatprep.subr.bf16.mxu0 %v2134_v9  ;;  %v733_v48 = vsel %vm685_vm8, %v681_v44, 0  ;;  %v2564_v50 = vsel %vm685_vm8, %v562_v43, 0 }
 0x1de   : > { %1617 = vmatmul.mubr.msk.bf16.vlgmr.msra.gmra.mrb[8].mxu1 %vm268_vm5, %v566_v45 }
 0x1df   : > { %1628 = vmatprep.mubr.msk.bf16.mxu1 %vm2135_vm4, %v2134_v9  ;;  %1627 = vmatpush3.bf16.msra.mxu1 %v687_v47 }
 0x1e0   : > { %1623 = vmatmul.mubr.msk.bf16.vlgmr.msra.gmra.mrb[12].mxu0 %vm268_vm5, %v567_v46  ;;  %1638 = vmatprep.subr.bf16.mxu1 %v2134_v9 }
 0x1e1   : > { %1634 = vmatprep.mubr.msk.bf16.mxu0 %vm2135_vm4, %v2134_v9  ;;  %1633 = vmatpush3.bf16.msra.mxu0 %v733_v48 }
 0x1e2   : > { %1644 = vmatprep.subr.bf16.mxu0 %v2134_v9 }
 0x2a9   : > { %v482_v51 = vpop.f32.mrb[4].mxu1 }
 0x2aa   : > { %v534_v52 = vmul.f32 0.25, %v482_v51  ;;  %v1606_v53 = vpop.f32.mrb[5].mxu1 }
 0x2ab   : > { %v485_v54 = vpop.f32.mrb[6].mxu1  ;;  %v528_v55 = vpop.f32.mrb[8].mxu0 }
 0x2ac   : > { %v535_v56 = vmul.f32 0.25, %v528_v55  ;;  %v1607_v57 = vpop.f32.mrb[7].mxu1  ;;  %v1612_v58 = vpop.f32.mrb[9].mxu0  ;;  %v537_v59 = vsel %vm536_vm9, %v534_v52, -inf }
 0x2ad   : > { %538 = vmax.xlane.f32.xlu1 %v537_v59  ;;  %v531_v60 = vpop.f32.mrb[10].mxu0 }
 0x2ae   : > { %v1613_v61 = vpop.f32.mrb[11].mxu0  ;;  %v540_v62 = vsel %vm536_vm9, %v535_v56, -inf }
 0x2b1   : > { %v605_v63 = vpop.f32.mrb[8].mxu1  ;;  %541 = vmax.xlane.f32.xlu1 %v540_v62 }
 0x2b2   : > { %v654_v0 = vmul.f32 0.25, %v605_v63  ;;  %v1618_v4 = vpop.f32.mrb[9].mxu1 }
 0x2b3   : > { %v608_v5 = vpop.f32.mrb[10].mxu1  ;;  %v648_v6 = vpop.f32.mrb[12].mxu0 }
 0x2b4   : > { %v655_v10 = vmul.f32 0.25, %v648_v6  ;;  %v1619_v11 = vpop.f32.mrb[11].mxu1  ;;  %v1624_v12 = vpop.f32.mrb[13].mxu0  ;;  %v656_v13 = vsel %vm536_vm9, %v654_v0, -inf }
 0x2b5   : > { %657 = vmax.xlane.f32.xlu0 %v656_v13  ;;  %v651_v14 = vpop.f32.mrb[14].mxu0 }
 0x2b6   : > { %v1625_v15 = vpop.f32.mrb[15].mxu0  ;;  %v659_v16 = vsel %vm536_vm9, %v655_v10, -inf }
 0x2b9   : > { %660 = vmax.xlane.f32.xlu0 %v659_v16 }
 0x33a   : > { %v539_v17 = vpop.xlane.xlu1 %538 }
 0x33b   : > { %v543_v18 = vsub.f32 %v534_v52, %v539_v17 }
 0x33d   : > { %v545_v22 = vmul.f32 1.442695, %v543_v18 }
 0x33e   : > { %v542_v19 = vpop.xlane.xlu1 %541 }
 0x33f   : > { %v544_v23 = vsub.f32 %v535_v56, %v542_v19 }
 0x341   : > { %v547_v27 = vmul.f32 1.442695, %v544_v23 }
 0x342   : > { %v658_v20 = vpop.xlane.xlu0 %657 }
 0x343   : > { %v662_v21 = vsub.f32 %v654_v0, %v658_v20 }
 0x345   : > { %v664_v24 = vmul.f32 1.442695, %v662_v21 }
 0x346   : > { %v661_v25 = vpop.xlane.xlu0 %660 }
 0x347   : > { %1750 = vpow2.f32 %v664_v24  ;;  %v663_v26 = vsub.f32 %v655_v10, %v661_v25 }
 0x348   : > { %1752 = vpow2.f32 %v545_v22 }
 0x349   : > { %v666_v28 = vmul.f32 1.442695, %v663_v26  ;;  %v1747_v26 = vld [vmem:[%s918_s9 + $0x8] sm:$0xff]  }
 0x34b   : > { %1754 = vpow2.f32 %v666_v28 }
 0x34c   : > { %1756 = vpow2.f32 %v547_v27 }
 0x351   : > { %v1751_v29 = vpop.eup %1750 }
 0x352   : > { %v668_v30 = vsel %vm536_vm9, %v1751_v29, 0.0  ;;  %v1753_v31 = vpop.eup %1752 }
 0x353   : > { %669 = vadd.xlane.f32.xlu0 %v668_v30  ;;  %v549_v33 = vsel %vm536_vm9, %v1753_v31, 0.0 }
 0x355   : > { %v1755_v32 = vpop.eup %1754 }
 0x356   : > { %v671_v34 = vsel %vm536_vm9, %v1755_v32, 0.0  ;;  %v1757_v35 = vpop.eup %1756 }
 0x357   : > { %550 = vadd.xlane.f32.xlu0 %v549_v33  ;;  %672 = vadd.xlane.f32.xlu1 %v671_v34  ;;  %v552_v36 = vsel %vm536_vm9, %v1757_v35, 0.0 }
 0x35b   : > { %553 = vadd.xlane.f32.xlu1 %v552_v36 }
 0x3e0   : > { %v670_v37 = vpop.xlane.xlu0 %669 }
 0x3e1   : > { %1758 = vrcp.f32 %v670_v37 }
 0x3e4   : > { %v673_v38 = vpop.xlane.xlu1 %672  ;;  %v551_v39 = vpop.xlane.xlu0 %550 }
 0x3e5   : > { %1760 = vrcp.f32 %v673_v38 }
 0x3e6   : > { %1762 = vrcp.f32 %v551_v39  ;;  %v1511_v39 = vld [vmem:[%s871_s18] ss:$0 sm:$0xff] }
 0x3e8   : > { %v554_v40 = vpop.xlane.xlu1 %553 }
 0x3e9   : > { %1764 = vrcp.f32 %v554_v40 }
 0x3eb   : > { %v1759_v41 = vpop.eup %1758 }
 0x3ec   : > { %v676_v42 = vmul.f32 %v1759_v41, %v1751_v29 }
 0x3ee   : > { %v678_v43 = vpack.c.bf16 %v676_v42, %v676_v42 }
 0x3ef   : > { %v1761_v44 = vpop.eup %1760 }
 0x3f0   : > { %v1763_v45 = vpop.eup %1762  ;;  %v677_v46 = vmul.f32 %v1761_v44, %v1755_v32  ;;  %1629 = vmatmul.mubr.msk.bf16.vlgmr.msra.gmra.mrb[12].mxu1 %vm536_vm9, %v678_v43  ;;  %v1748_v44 = vld [vmem:[%s991_s14] sm:$0xff]  }
 0x3f1   : > { %1639 = vmatpush3.bf16.msra.mxu1 %v2562_v49  ;;  %1640 = vmatprep.mubr.msk.bf16.mxu1 %vm2135_vm4, %v2134_v9  ;;  %v557_v47 = vmul.f32 %v1763_v45, %v1753_v31  ;;  %v1749_v45 = vld [vmem:[%s991_s14 + $0x8] sm:$0xff]  }
 0x3f2   : > { %v679_v48 = vpack.c.bf16 %v677_v46, %v677_v46  ;;  %1650 = vmatprep.subr.bf16.mxu1 %v2134_v9  ;;  %v1513_v46 = vld [vmem:[%s923_s25] ss:$0 sm:$0xff] }
 0x3f3   : > { %v1765_v51 = vpop.eup %1764  ;;  %v559_v53 = vpack.c.bf16 %v557_v47, %v557_v47 }
 0x3f4   : > { %1635 = vmatmul.mubr.msk.bf16.vlgmr.msra.gmra.mrb[16].mxu0 %vm536_vm9, %v679_v48  ;;  %v558_v52 = vmul.f32 %v1765_v51, %v1757_v35  ;;  %v1510_v35 = vld [vmem:[%s869_s26] ss:$0 sm:$0xff] }
 0x3f5   : > { %1645 = vmatpush3.bf16.msra.mxu0 %v2564_v50  ;;  %1646 = vmatprep.mubr.msk.bf16.mxu0 %vm2135_vm4, %v2134_v9 }
 0x3f6   : > { %1658 = vmatprep.subr.bf16.mxu0 %v2134_v9  ;;  %v560_v49 = vpack.c.bf16 %v558_v52, %v558_v52 }
 0x3f8   : > { %1641 = vmatmul.mubr.msk.bf16.vlgmr.msra.gmra.mrb[16].mxu1 %vm536_vm9, %v559_v53 }
 0x3f9   : > { %1654 = vmatprep.mubr.msk.bf16.mxu1 %vm2135_vm4, %v2134_v9 }
 0x3fc   : > { %1647 = vmatmul.mubr.msk.bf16.vlgmr.msra.gmra.mrb[20].mxu0 %vm536_vm9, %v560_v49 }
 0x3fd   : > { %1662 = vmatprep.mubr.msk.bf16.mxu0 %vm2135_vm4, %v2134_v9  ;;  %1659 = vmatpush3.bf16.msra.mxu0 %v1748_v44 }
 0x3fe   : > { %1660 = vmatprep.subr.bf16.mxu0 %v2134_v9 }
 0x401   : > { %1661 = vmatpush3.bf16.msra.mxu0 %v1749_v45 }
 0x4c3   : > { %v723_v54 = vpop.f32.mrb[12].mxu1 }
 0x4c4   : > { %v1630_v50 = vpop.f32.mrb[13].mxu1 }
 0x4c5   : > { %v726_v55 = vpop.f32.mrb[14].mxu1 }
 0x4c6   : > { %v1631_v56 = vpop.f32.mrb[15].mxu1 }
 0x4c7   : > { %v769_v57 = vpop.f32.mrb[16].mxu0  ;;  %v1518_v56 = vld [vmem:[%s996_s29] ss:$0 sm:$0xff] }
 0x4c8   : > { %v1636_v58 = vpop.f32.mrb[17].mxu0 }
 0x4c9   : > { %v772_v59 = vpop.f32.mrb[18].mxu0 }
 0x4ca   : > { %v1637_v60 = vpop.f32.mrb[19].mxu0 }
 0x4cb   : > { %v815_v61 = vpop.f32.mrb[16].mxu1 }
 0x4cc   : > { %v816_v62 = vadd.f32 %v815_v61, %v723_v54  ;;  %v1642_v63 = vpop.f32.mrb[17].mxu1 }
 0x4cd   : > { %v818_v0 = vpop.f32.mrb[18].mxu1 }
 0x4ce   : > { %v1643_v4 = vpop.f32.mrb[19].mxu1  ;;  %v867_v5 = vadd.f32 %v2112_v7, %v816_v62 }
 0x4cf   : > { %v861_v6 = vpop.f32.mrb[20].mxu0 }
 0x4d0   : > { %v862_v10 = vadd.f32 %v861_v6, %v769_v57  ;;  %v1648_v11 = vpop.f32.mrb[21].mxu0  ;;  %v873_v12 = vsel %vm268_vm5, %v867_v5, 0.0 }
 0x4d1   : > { %874 = vadd.xlane.f32.xlu0 %v873_v12  ;;  %v864_v13 = vpop.f32.mrb[22].mxu0 }
 0x4d2   : > { %v1649_v14 = vpop.f32.mrb[23].mxu0  ;;  %v868_v15 = vadd.f32 %v2108_v8, %v862_v10  ;;  %v1746_v8 = vld [vmem:[%s918_s9] sm:$0xff]  }
 0x4d3   : > { %1651 = vmatpush3.bf16.msra.mxu1 %v1746_v8 }
 0x4d4   : > { %v876_v16 = vsel %vm268_vm5, %v868_v15, 0.0  ;;  %1652 = vmatprep.subr.bf16.mxu1 %v2134_v9 }
 0x4d5   : > { %877 = vadd.xlane.f32.xlu1 %v876_v16 }
 0x4d7   : > { %1653 = vmatpush3.bf16.msra.mxu1 %v1747_v26  ;;  %v1523_v26 = vld [vmem:[%s1064_s4] ss:$0 sm:$0xff] }
 0x55e   : > { %v875_v17 = vpop.xlane.xlu0 %874 }
 0x55f   : > { %v880_v18 = vmul.f32 0.03125, %v875_v17 }
 0x561   : > { %v882_v19 = vsub.f32 %v867_v5, %v880_v18 }
 0x562   : > { %v878_v20 = vpop.xlane.xlu1 %877 }
 0x563   : > { %v881_v21 = vmul.f32 0.03125, %v878_v20  ;;  %v884_v7 = vmul.f32 %v882_v19, %v882_v19 }
 0x565   : > { %v883_v22 = vsub.f32 %v868_v15, %v881_v21  ;;  %v886_v23 = vsel %vm268_vm5, %v884_v7, 0.0 }
 0x566   : > { %887 = vadd.xlane.f32.xlu0 %v886_v23 }
 0x567   : > { %v885_v24 = vmul.f32 %v883_v22, %v883_v22 }
 0x569   : > { %v889_v25 = vsel %vm268_vm5, %v885_v24, 0.0  ;;  %v1522_v24 = vld [vmem:[%s1062_s23] ss:$0 sm:$0xff] }
 0x56a   : > { %890 = vadd.xlane.f32.xlu1 %v889_v25 }
 0x5f3   : > { %v888_v27 = vpop.xlane.xlu0 %887 }
 0x5f4   : > { %v892_v28 = vmul.f32 0.03125, %v888_v27 }
 0x5f6   : > { %v894_v29 = vadd.f32 1e-05, %v892_v28 }
 0x5f7   : > { %v891_v30 = vpop.xlane.xlu1 %890 }
 0x5f8   : > { %1766 = vrsqrt.f32 %v894_v29  ;;  %v893_v31 = vmul.f32 0.03125, %v891_v30 }
 0x5fa   : > { %v895_v32 = vadd.f32 1e-05, %v893_v31 }
 0x5fc   : > { %1768 = vrsqrt.f32 %v895_v32  ;;  %v1776_v32 = vld [vmem:[#allocation14] sm:$0xff] (%p242_p12)  }
 0x602   : > { %v1767_v33 = vpop.eup %1766 }
 0x603   : > { %v898_v34 = vmul.f32 %v1767_v33, %v882_v19  ;;  %v2136_v33 = vmov (%p242_p12), 0.0  }
 0x604   :  { %1666 = vmatprep.subr.bf16.mxu0 (%p242_p12), %v2136_v33  ;;  %1674 = vmatprep.subr.bf16.mxu1 (%p242_p12), %v2136_v33 }
 0x605   : > { %v906_v37 = vmul.f32 %v1510_v35, %v898_v34  ;;  %v1777_v34 = vld [vmem:[#allocation14 + $0x8] sm:$0xff] (%p242_p12)  }
 0x606   : > { %v1769_v36 = vpop.eup %1768 }
 0x607   : > { %v899_v38 = vmul.f32 %v1769_v36, %v883_v22  ;;  %v914_v41 = vadd.f32 %v1511_v39, %v906_v37 }
 0x609   : > { %v907_v40 = vmul.f32 %v1510_v35, %v899_v38 }
 0x60b   : > { %v915_v42 = vadd.f32 %v1511_v39, %v907_v40 }
 0x60d   : > { %v916_v43 = vpack.c.bf16 %v915_v42, %v914_v41 }
 0x60f   : > { %1655 = vmatmul.mubr.msk.bf16.vlgmr.msra.gmra.mrb[20].mxu1 %vm268_vm5, %v916_v43 }
 0x610   :  { %1676 = vmatprep.mubr.msk.bf16.mxu1 (%p242_p12), %vm2137_vm10, %v2136_v33 }
 0x6e2   : > { %v980_v47 = vpop.f32.mrb[20].mxu1 }
 0x6e3   : > { %v981_v48 = vadd.f32 %v1513_v46, %v980_v47  ;;  %v1656_v51 = vpop.f32.mrb[21].mxu1 }
 0x6e4   : > { %v983_v52 = vpop.f32.mrb[22].mxu1  ;;  %v1197_v51 = vshrl.u32 (%p242_p12), %v232_v1, 7 }
 0x6e5   : > { %v984_v53 = vadd.f32 %v1513_v46, %v983_v52  ;;  %v1657_v49 = vpop.f32.mrb[23].mxu1  ;;  %v987_v54 = vmax.f32 %v981_v48, 0.0 }
 0x6e6   :  { %v1214_v1 = vsub.s32 (%p242_p12), 0, %v1197_v51 }
 0x6e7   : > { %v988_v50 = vmax.f32 %v984_v53, 0.0  ;;  %v2645_v53 = vsub.s32 (%p242_p12), %v2443_v2, %v1197_v51 }
 0x6e9   : > { %v989_v55 = vpack.c.bf16 %v988_v50, %v987_v54 }
 0x6eb   : > { %1663 = vmatmul.mubr.msk.bf16.vlgmr.msra.gmra.mrb[24].mxu0 %vm268_vm5, %v989_v55 }
 0x6ec   :  { %1667 = vmatpush3.bf16.msra.mxu0 (%p242_p12), %v1776_v32  ;;  %1670 = vmatprep.mubr.msk.bf16.mxu0 (%p242_p12), %vm2137_vm10, %v2136_v33 }
 0x6ed   :  { %1668 = vmatprep.subr.bf16.mxu0 (%p242_p12), %v2136_v33 }
 0x6f0   :  { %1669 = vmatpush3.bf16.msra.mxu0 (%p242_p12), %v1777_v34 }
 0x7be   : > { %v1053_v57 = vpop.f32.mrb[24].mxu0 }
 0x7bf   : > { %v1054_v58 = vadd.f32 %v1518_v56, %v1053_v57  ;;  %v1664_v9 = vpop.f32.mrb[25].mxu0  ;;  %v2138_v57 = vmov (%p242_p12), 0  }
 0x7c0   : > { %v1056_v59 = vpop.f32.mrb[26].mxu0  ;;  %1775 = vset.pattern.permute.xlu0 (%p242_p12), %v2138_v57  ;;  %1774 = vset.pattern.permute.xlu1 (%p242_p12), %v2138_v57 }
 0x7c1   : > { %v1057_v60 = vadd.f32 %v1518_v56, %v1056_v59  ;;  %v1665_v61 = vpop.f32.mrb[27].mxu0  ;;  %v1060_v62 = vadd.f32 %v1054_v58, %v914_v41  ;;  %v1218_v58 = vsub.s32 (%p242_p12), 1, %v1197_v51 }
 0x7c3   : > { %v1066_v63 = vsel %vm268_vm5, %v1060_v62, 0.0  ;;  %v1061_v0 = vadd.f32 %v1057_v60, %v915_v42  ;;  %v1528_v42 = vld [vmem:[#allocation17] ss:$0 sm:$0xff] (%p242_p12) }
 0x7c4   : > { %1067 = vadd.xlane.f32.xlu0 %v1066_v63 }
 0x7c5   : > { %v1069_v4 = vsel %vm268_vm5, %v1061_v0, 0.0 }
 0x7c6   : > { %1070 = vadd.xlane.f32.xlu1 %v1069_v4 }
 0x851   : > { %v1068_v5 = vpop.xlane.xlu0 %1067 }
 0x852   : > { %v1072_v6 = vmul.f32 0.03125, %v1068_v5 }
 0x853   : > { %v1071_v10 = vpop.xlane.xlu1 %1070 }
 0x854   : > { %v1074_v11 = vsub.f32 %v1060_v62, %v1072_v6  ;;  %v1073_v12 = vmul.f32 0.03125, %v1071_v10 }
 0x856   : > { %v1075_v13 = vsub.f32 %v1061_v0, %v1073_v12  ;;  %v1076_v14 = vmul.f32 %v1074_v11, %v1074_v11 }
 0x858   : > { %v1078_v15 = vsel %vm268_vm5, %v1076_v14, 0.0  ;;  %v1077_v16 = vmul.f32 %v1075_v13, %v1075_v13 }
 0x859   : > { %1079 = vadd.xlane.f32.xlu0 %v1078_v15 }
 0x85a   : > { %v1081_v17 = vsel %vm268_vm5, %v1077_v16, 0.0 }
 0x85b   : > { %1082 = vadd.xlane.f32.xlu1 %v1081_v17 }
 0x8e6   : > { %v1080_v18 = vpop.xlane.xlu0 %1079 }
 0x8e7   : > { %v1084_v19 = vmul.f32 0.03125, %v1080_v18 }
 0x8e8   : > { %v1083_v20 = vpop.xlane.xlu1 %1082 }
 0x8e9   : > { %v1086_v21 = vadd.f32 1e-05, %v1084_v19  ;;  %v1085_v7 = vmul.f32 0.03125, %v1083_v20  ;;  %v1290_v20 = vld [vmem:[%s2728_s5 + $0x1] sm:$0x1] (%p242_p12) }
 0x8eb   : > { %1770 = vrsqrt.f32 %v1086_v21  ;;  %v1087_v22 = vadd.f32 1e-05, %v1085_v7  ;;  %v1298_v21 = vpack.c.bf16 (%p242_p12), %v1290_v20, %v1290_v20 }
 0x8ed   : > { %1772 = vrsqrt.f32 %v1087_v22 }
 0x8f5   : > { %v1771_v23 = vpop.eup %1770 }
 0x8f6   : > { %v1090_v25 = vmul.f32 %v1771_v23, %v1074_v11  ;;  %v1303_v23 = vunpack.c.l.b16 (%p242_p12), %v1298_v21 }
 0x8f7   : > { %v1773_v8 = vpop.eup %1772 }
 0x8f8   : > { %v1098_v27 = vmul.f32 %v1522_v24, %v1090_v25  ;;  %v1091_v28 = vmul.f32 %v1773_v8, %v1075_v13  ;;  %244 = sbr.rel (!%p242_p12) target bundleno = 233 (0xe9), region = 170 }
 0x8fa   : > { %v1106_v29 = vadd.f32 %v1523_v26, %v1098_v27   ;;  %v1099_v30 = vmul.f32 %v1522_v24, %v1091_v28  ;;  %v1299_v24 = vld [vmem:[#allocation20] sm:$0x3] (%p242_p12) }
 0x8fc   : > { %v1107_v31 = vadd.f32 %v1523_v26, %v1099_v30   ;;  %v2727_v7 = vmov %v1106_v29  ;;  %v1313_v26 = vsel (%p242_p12), %vm1311_vm13, %v1299_v24, 0  ;;  %v1779_v30 = vld [vmem:[#allocation18 + $0x8] sm:$0xff] (%p242_p12)  }
 0x8fd   :  { %v1289_v7 = vld [vmem:[%s2728_s5] sm:$0x1] (%p242_p12)  ;;  %1675 = vmatpush3.bf16.msra.mxu1 (%p242_p12), %v1313_v26 }
 0x8fe   : > { %v2726_v8 = vmov %v1107_v31  ;;  %v1108_v35 = vpack.c.bf16 (%p242_p12), %v1107_v31, %v1106_v29  ;;  %v1297_v22 = vpack.c.bf16 (%p242_p12), %v1289_v7, %v1289_v7  ;;  %1680 = vmatprep.subr.bf16.mxu1 (%p242_p12), %v2136_v33  ;;  %v1778_v29 = vld [vmem:[#allocation18] sm:$0xff] (%p242_p12)  }
 0x8ff   :  { %v1304_v8 = vrot.slane %v1303_v23, 7 }
 0x900   :  { %1671 = vmatmul.mubr.msk.bf16.vlgmr.msra.gmra.mrb[0].mxu0 %vm268_vm5, %v1108_v35  ;;  %v1302_v25 = vunpack.c.l.b16 %v1297_v22 }
 0x902   :  { %v1305_v27 = vsel %vm1204_vm11, %v1304_v8, %v1302_v25 }
 0x903   :  { %v1306_v28 = vpack.c.b16 %v1305_v27, %v1305_v27 }
 0x905   :  { %1677 = vmatmul.mubr.msk.bf16.vlgmr.msra.gmra.mrb[0].mxu1 %vm1307_vm14, %v1306_v28 }
 0x906   :  { %1684 = vmatprep.mubr.msk.bf16.mxu1 %vm2137_vm10, %v2136_v33  ;;  %1681 = vmatpush3.bf16.msra.mxu1 %v1778_v29 }
 0x907   :  { %1682 = vmatprep.subr.bf16.mxu1 %v2136_v33 }
 0x90a   :  { %1683 = vmatpush3.bf16.msra.mxu1 %v1779_v30 }
 0x9d3   :  { %v1170_v36 = vpop.f32.mrb[0].mxu0 }
 0x9d4   :  { %v1171_v37 = vadd.f32 %v1524_v3, %v1170_v36  ;;  %v1672_v38 = vpop.f32.mrb[1].mxu0 }
 0x9d5   :  { %v1173_v39 = vpop.f32.mrb[2].mxu0 }
 0x9d6   :  { %1780 = vtanh.f32 %v1171_v37  ;;  %v1174_v40 = vadd.f32 %v1524_v3, %v1173_v39  ;;  %v1673_v41 = vpop.f32.mrb[3].mxu0 }
 0x9d8   :  { %1782 = vtanh.f32 %v1174_v40 }
 0x9e0   :  { %v2635_v43 = vpop.eup %1780 }
 0x9e1   :  { %v1186_v44 = vmul.f32 %v2635_v43, %v1528_v42 }
 0x9e2   :  { %v2638_v45 = vpop.eup %1782 }
 0x9e3   :  { %v1188_v46 = vsel %vm268_vm5, %v1186_v44, 0.0  ;;  %v1187_v47 = vmul.f32 %v2638_v45, %v1528_v42 }
 0x9e4   :  { %1189 = vadd.xlane.f32.xlu0 %v1188_v46 }
 0x9e5   :  { %v1191_v48 = vsel %vm268_vm5, %v1187_v47, 0.0 }
 0x9e8   :  { %1192 = vadd.xlane.f32.xlu0 %v1191_v48 }
 0xa71   :  { %v1190_v52 = vpop.xlane.xlu0 %1189 }
 0xa72   :  { %v1199_v54 = vrot.slane %v1190_v52, %v2645_v53 }
 0xa75   :  { %v1193_v49 = vpop.xlane.xlu0 %1192 }
 0xa76   :  { %v1203_v50 = vrot.slane %v1193_v49, %v2645_v53 }
 0xa78   :  { %v1205_v55 = vsel %vm1204_vm11, %v1203_v50, %v1199_v54 }
 0xa79   :  { %v1208_v56 = vsel %vm1207_vm12, %v1205_v55, -inf  ;;  %v1429_v55 = vld [vmem:[#allocation2] sm:$0x1] }
 0xa7a   :  { %1209 = vmax.xlane.f32.xlu1 %v1208_v56  ;;  %1692 = vpush %v1429_v55 }
 0xaab   :  { %s1693_s7 = spop %1692 }
 0xb07   :  { %v1210_v9 = vpop.xlane.xlu1 %1209 }
 0xb08   :  { %v1215_v2 = vrot.slane %v1210_v9, %v1214_v1  ;;  %v1219_v59 = vrot.slane %v1210_v9, %v1218_v58  ;;  %v1533_v9 = vld [vmem:[#allocation21] ss:$0 sm:$0xff] }
 0xb0a   :  { %v1222_v60 = vsub.f32 %v1190_v52, %v1215_v2  ;;  %v1223_v61 = vsub.f32 %v1193_v49, %v1219_v59 }
 0xb0c   :  { %v1224_v62 = vmul.f32 1.442695, %v1222_v60  ;;  %v1226_v63 = vmul.f32 1.442695, %v1223_v61  ;;  %v1431_v61 = vstv %s1693_s7 }
 0xb0e   :  { %1784 = vpow2.f32 %v1224_v62 }
 0xb0f   :  { %1786 = vpow2.f32 %v1226_v63 }
 0xb18   :  { %v1785_v0 = vpop.eup %1784 }
 0xb19   :  { %v1787_v4 = vpop.eup %1786  ;;  %1231 = vperm.xlu1 %1774, %v1785_v0  }
 0xb1a   :  { %1234 = vperm.xlu0 %1775, %v1787_v4  }
 0xb98   :  { %v1232_v5 = vpop.permute.xlu1 %1231 }
 0xb99   :  { %v1235_v6 = vpop.permute.xlu0 %1234  ;;  %v1239_v10 = vrot.slane %v1232_v5, %v2645_v53 }
 0xb9a   :  { %v1243_v11 = vrot.slane %v1235_v6, %v2645_v53 }
 0xb9c   :  { %v1244_v12 = vsel %vm1204_vm11, %v1243_v11, %v1239_v10 }
 0xb9d   :  { %v1246_v13 = vsel %vm1207_vm12, %v1244_v12, 0.0 }
 0xb9e   :  { %1247 = vadd.xlane.f32.xlu1 %v1246_v13 }
 0xc2b   :  { %v1248_v14 = vpop.xlane.xlu1 %1247 }
 0xc2c   :  { %1788 = vrcp.f32 %v1248_v14 }
 0xc36   :  { %v1789_v15 = vpop.eup %1788 }
 0xc37   :  { %v1254_v16 = vrot.slane %v1789_v15, %v1214_v1  ;;  %v1258_v18 = vrot.slane %v1789_v15, %v1218_v58 }
 0xc39   :  { %v1261_v17 = vmul.f32 %v1785_v0, %v1254_v16  ;;  %v1262_v19 = vmul.f32 %v1787_v4, %v1258_v18 }
 0xc3b   :  { %1265 = vperm.xlu0 %1775, %v1261_v17  }
 0xc3f   :  { %1270 = vperm.xlu0 %1775, %v1262_v19  }
 0xcba   :  { %v1266_v31 = vpop.permute.xlu0 %1265 }
 0xcbb   :  { %v1273_v32 = vmul.f32 %v2635_v43, %v1266_v31 }
 0xcbd   :  { %v1275_v34 = vsel %vm268_vm5, %v1273_v32, 0.0 }
 0xcbe   :  { %v1276_v35 = vrot.slane %v1275_v34, 4  ;;  %v1271_v3 = vpop.permute.xlu0 %1270 }
 0xcbf   :  { %v1274_v36 = vmul.f32 %v2638_v45, %v1271_v3 }
 0xcc0   :  { %v1277_v37 = vadd.f32 %v1276_v35, %v1275_v34 }
 0xcc1   :  { %v1282_v38 = vsel %vm268_vm5, %v1274_v36, 0.0 }
 0xcc2   :  { %v1278_v39 = vrot.slane %v1277_v37, 2  ;;  %v1283_v40 = vrot.slane %v1282_v38, 4 }
 0xcc4   :  { %v1279_v41 = vadd.f32 %v1278_v39, %v1277_v37  ;;  %v1284_v42 = vadd.f32 %v1283_v40, %v1282_v38 }
 0xcc6   :  { %v1280_v44 = vrot.slane %v1279_v41, 1  ;;  %v1285_v33 = vrot.slane %v1284_v42, 2 }
 0xcc8   :  { %v1281_v46 = vadd.f32 %v1280_v44, %v1279_v41  ;;  %v1286_v47 = vadd.f32 %v1285_v33, %v1284_v42 }
 0xcca   :  { %v1287_v48 = vrot.slane %v1286_v47, 1  ;;  %v1291_v51 = vpack.c.bf16 %v1281_v46, %v1281_v46 }
 0xccc   :  { %v1288_v43 = vadd.f32 %v1287_v48, %v1286_v47  ;;  %v1357_v49 = vunpack.c.l.b16 %v1291_v51 }
 0xcce   :  { %v1292_v52 = vpack.c.bf16 %v1288_v43, %v1288_v43 }
 0xcd0   :  { %v1358_v54 = vunpack.c.l.b16 %v1292_v52 }
 0xcd2   :  { %v1359_v50 = vsel %vm1204_vm11, %v1358_v54, %v1357_v49 }
 0xcd3   :  { %v1360_v45 = vpack.c.b16 %v1359_v50, %v1359_v50 }
 0xcd5   :  { %1685 = vmatmul.mubr.msk.bf16.vlgmr.msra.gmra.mrb[0].mxu1 %vm268_vm5, %v1360_v45 }
 0xda8   :  { %v1410_v56 = vpop.f32.mrb[0].mxu1 }
 0xda9   :  { %1790 = vtanh.f32 %v1410_v56  ;;  %v1686_v57 = vpop.f32.mrb[1].mxu1 }
 0xdaa   :  { %v1413_v1 = vpop.f32.mrb[2].mxu1 }
 0xdab   :  { %v1687_v58 = vpop.f32.mrb[3].mxu1 }
 0xdb3   :  { %v1791_v2 = vpop.eup %1790 }
 0xdb4   :  { %v1424_v59 = vmul.f32 %v1791_v2, %v1533_v9 }
 0xdb6   :  { %v1426_v60 = vsel %vm1425_vm15, %v1424_v59, 0.0 }
 0xdb7   :  { %1427 = vadd.xlane.f32.xlu1 %v1426_v60 }
 0xe44   :  { %v1428_v62 = vpop.xlane.xlu1 %1427 }
 0xe45   :  { %v1432_v63 = vadd.f32 %v1431_v61, %v1428_v62 }
 0xe47   :  { %v1437_v0 = vrot.slane %v1432_v63, %v2645_v53 }
 0xe49   :  { %1440 = vst.msk [vmem:[#allocation23] sm:$0x1] %vm1439_vm0, %v1437_v0 }
 0xe4a   :  { %2067 = shalt.err (!%p2064_p3)
}
 0xe4b   :  { %s2068_s1 = scalar_lea.hbm %s2706_s21, 16 }
 0xe4c   :  { %p2069_p4 = scmp.ne.s32.totalorder %s2706_s21, %s2068_s1  ;;  %p2072_p5 = scmp.lt.u32.totalorder %s2068_s1, %s2706_s21 }
 0xe4e   :  { %p2074_p6 = pnand %p2072_p5, %p2069_p4 }
 0xe50   :  { %2077 = shalt.err (!%p2074_p6)
}
 0xe51   :  { %1450 = dma.vmem_to_hbm [thread:$0]  %s1448_s22, 16, %s2706_s21, [#allocation5]  }
 0xe52   :  { %2104 = dma.done.wait [#allocation5], 16  }
 0xe53   :  { %2105 = vsyncadd [#allocation5], 4294967280 }
 0xe54   :  { %1454 = vsyncpa [#allocation4], 1 }
 0xe55   :  { %1455 = vsyncpa [#allocation7], 1 }
 0xe56   :  { %1456 = vsyncpa [#allocation10], 1 }
 0xe57   :  { %1457 = vsyncpa [#allocation13], 1 }
 0xe58   :  { %1458 = vsyncpa [#allocation16], 1 }
 0xe59   :  { %1459 = vsyncpa [#allocation19], 1 }
 0xe5a   :  { %1460 = vsyncpa [#allocation22], 1 }
 0xe5b   :  { %1461 = vsyncpa [#allocation5], 1 }

</bundles_post_ra>
